<compile_context>
chip_gen: v6e
topology: v6e:2x2x1
jax: 0.10.0
libtpu: 0.0.40
codegen_flags: <defaults>
</compile_context>

<pallas_src>
import math
import functools

import jax
import jax.numpy as jnp
import numpy as np
from jax import lax
from jax.experimental import pallas as pl
from jax.experimental.pallas import tpu as pltpu  # noqa: F401  (no grid/DMA needed at this size)

# ---------------- problem configuration (small, consistent with module) ----
B = 2            # batch
C = 32           # channels (must be divisible by 32 for GroupNorm32)
HW = 8           # spatial side
T = HW * HW      # flattened spatial length
NUM_HEADS = 4
HEAD_CH = C // NUM_HEADS
GN_GROUPS = 32
GN_EPS = 1e-5


def _segment_matrices(batch, seq, dtype):
    """One-hot token->batch segment matrices, built without integer division.

    seg   [B*T, B]: seg[i, b]   = 1 iff token i belongs to batch b
    seg_t [B, B*T]: seg_t[b, i] = 1 iff token i belongs to batch b
    """
    bt = batch * seq
    i1 = lax.broadcasted_iota(jnp.int32, (bt, batch), 0)
    b1 = lax.broadcasted_iota(jnp.int32, (bt, batch), 1)
    seg = jnp.logical_and(i1 >= b1 * seq, i1 < (b1 + 1) * seq).astype(dtype)
    i2 = lax.broadcasted_iota(jnp.int32, (batch, bt), 1)
    b2 = lax.broadcasted_iota(jnp.int32, (batch, bt), 0)
    seg_t = jnp.logical_and(i2 >= b2 * seq, i2 < (b2 + 1) * seq).astype(dtype)
    return seg, seg_t


def attention_block_kernel(x_ref, gamma_ref, beta_ref,
                           qkv_w_ref, qkv_b_ref,
                           proj_w_ref, proj_b_ref,
                           o_ref, *, num_heads, batch, seq, groups, eps):
    """Full batch in one shot. x_ref / o_ref are [C, B*T] (lane-dense)."""
    x = x_ref[...]                                  # [C, BT] fp32
    c, bt = x.shape
    ch = c // num_heads
    cpg = c // groups                               # channels per group (1 here)
    n_per = cpg * seq                               # elements per (group, batch)

    seg, seg_t = _segment_matrices(batch, seq, x.dtype)   # [BT,B], [B,BT]

    # ---- GroupNorm(32), one-pass stats; segment sums as tiny MXU matmuls ----
    s1 = jnp.dot(x, seg, preferred_element_type=jnp.float32)       # [C, B]
    s2 = jnp.dot(x * x, seg, preferred_element_type=jnp.float32)   # [C, B]
    if cpg > 1:   # trace-time branch (no-op here since C/G == 1)
        s1 = s1.reshape(groups, cpg, batch).sum(axis=1)
        s2 = s2.reshape(groups, cpg, batch).sum(axis=1)
    inv_n = jnp.float32(1.0 / n_per)
    mean = s1 * inv_n                                               # [G, B]
    var = s2 * inv_n - mean * mean
    inv_std = lax.rsqrt(var + jnp.float32(eps))                     # [G, B]
    if cpg > 1:
        mean = jnp.broadcast_to(mean[:, None, :], (groups, cpg, batch)).reshape(c, batch)
        inv_std = jnp.broadcast_to(inv_std[:, None, :], (groups, cpg, batch)).reshape(c, batch)
    # fold affine into per-(channel,batch) scale/shift; broadcast across lanes via matmul
    scale_cb = gamma_ref[...] * inv_std                             # [C, B]
    shift_cb = beta_ref[...] - mean * scale_cb                      # [C, B]
    h = (x * jnp.dot(scale_cb, seg_t, preferred_element_type=jnp.float32)
         + jnp.dot(shift_cb, seg_t, preferred_element_type=jnp.float32))   # [C, BT]

    # ---- qkv 1x1 conv (matmul); attention scale pre-folded into q rows ------
    qkv = (jnp.dot(qkv_w_ref[...], h, preferred_element_type=jnp.float32)
           + qkv_b_ref[...])                                        # [3C, BT]
    # rows were permuted host-side to contiguous [q | k | v] blocks (head-major)
    q = qkv[0 * c:1 * c].reshape(num_heads, ch, bt)                 # [H, ch, BT]
    k = qkv[1 * c:2 * c].reshape(num_heads, ch, bt)
    v = qkv[2 * c:3 * c].reshape(num_heads, ch, bt)

    # ---- multi-head attention, batch folded into lanes ----------------------
    # scores[h, t, s] = sum_c q[h,c,t] * k[h,c,s]  (single batched dot_general)
    scores = lax.dot_general(q, k, (((1,), (1,)), ((0,), (0,))),
                             preferred_element_type=jnp.float32)    # [H, BT, BT]
    # block-diagonal mask: tokens may only attend within their own batch element
    block_mask = jnp.dot(seg, seg_t, preferred_element_type=jnp.float32) > 0.0
    scores = jnp.where(block_mask[None], scores, jnp.float32(-1e30))
    # hand-rolled softmax: exp on the EUP, divide as an EUP reciprocal
    s_max = jnp.max(scores, axis=-1, keepdims=True)
    p = jnp.exp(scores - s_max)
    denom = jnp.sum(p, axis=-1, keepdims=True)
    w = p * pl.reciprocal(denom, approx=True)                       # [H, BT, BT]
    # a[h, c, t] = sum_s v[h,c,s] * w[h,t,s]
    a = lax.dot_general(v, w, (((2,), (2,)), ((0,), (0,))),
                        preferred_element_type=jnp.float32)         # [H, ch, BT]
    a = a.reshape(c, bt)                                            # channel = h*ch + r

    # ---- output projection + residual, full-lane store ----------------------
    proj = (jnp.dot(proj_w_ref[...], a, preferred_element_type=jnp.float32)
            + proj_b_ref[...])                                      # [C, BT]
    o_ref[...] = x + proj


def _fold_qkv_params(qkv_w, qkv_b, channels, num_heads):
    """Load-time transform of the qkv 1x1-conv params.

    1) Permute rows from the legacy interleaved [head, (q|k|v), ch] order to
       contiguous [q | k | v] blocks (head-major inside each block) so the
       kernel slices tile-aligned row blocks.
    2) Bake the attention scaling ((q*s).(k*s), s = ch^-1/4  ==  q.k * ch^-1/2)
       into the q rows, removing two full-tensor scale multiplies per call.
    """
    ch = channels // num_heads
    new = np.arange(3 * channels)
    part = new // channels               # 0 = q, 1 = k, 2 = v
    rem = new % channels
    head = rem // ch
    r = rem % ch
    perm = head * (3 * ch) + part * ch + r          # old row feeding each new row
    row_scale = np.where(part == 0, 1.0 / math.sqrt(ch), 1.0).astype(np.float32)[:, None]
    return qkv_w[perm] * row_scale, qkv_b[perm] * row_scale


def attention_block(x, gamma, beta, qkv_w, qkv_b, proj_w, proj_b,
                    num_heads=NUM_HEADS, groups=GN_GROUPS, eps=GN_EPS):
    """Forward of AttentionBlock (encoder_out=None).

    x: [B, C, *spatial] fp32.  Params exactly as in the PyTorch module:
    gamma/beta [C,1], qkv_w [3C,C], qkv_b [3C,1], proj_w [C,C], proj_b [C,1].
    Returns [B, C, *spatial].
    """
    b, c, *spatial = x.shape
    t = int(np.prod(spatial))
    bt = b * t
    assert c % groups == 0 and c % num_heads == 0

    # lane-dense fold: [B, C, T] -> [C, B*T]  (layout plumbing outside the kernel)
    x_f = jnp.transpose(x.reshape(b, c, t), (1, 0, 2)).reshape(c, bt)
    # one-time (load-time in a real model) qkv weight transform
    qkv_w_f, qkv_b_f = _fold_qkv_params(qkv_w, qkv_b, c, num_heads)

    kernel = functools.partial(attention_block_kernel, num_heads=num_heads,
                               batch=b, seq=t, groups=groups, eps=eps)
    out_f = pl.pallas_call(
        kernel,
        out_shape=jax.ShapeDtypeStruct((c, bt), jnp.float32),
        # no grid: a single invocation over whole-array VMEM refs; the problem
        # (~tens of KiB) fits trivially, and this removes per-step pipeline
        # overhead and masked partial stores.
    )(x_f, gamma, beta, qkv_w_f, qkv_b_f, proj_w, proj_b)

    # unfold back to the module's output shape
    return jnp.transpose(out_f.reshape(c, b, t), (1, 0, 2)).reshape(b, c, *spatial)


def reference(x, gamma, beta, qkv_w, qkv_b, proj_w, proj_b,
              num_heads=NUM_HEADS, groups=GN_GROUPS, eps=GN_EPS):
    """Pure-JAX reference of AttentionBlock._forward (encoder_out=None)."""
    b, c, *spatial = x.shape
    t = int(np.prod(spatial))
    xf = x.reshape(b, c, t).astype(jnp.float32)
    xg = xf.reshape(b, groups, (c // groups) * t)
    mean = xg.mean(-1, keepdims=True)
    var = ((xg - mean) ** 2).mean(-1, keepdims=True)
    xn = ((xg - mean) / jnp.sqrt(var + eps)).reshape(b, c, t)
    h = xn * gamma[None] + beta[None]
    qkv = jnp.einsum('oc,bct->bot', qkv_w, h) + qkv_b[None]
    ch = c // num_heads
    qkv = qkv.reshape(b * num_heads, 3 * ch, t)
    q, k, v = qkv[:, :ch], qkv[:, ch:2 * ch], qkv[:, 2 * ch:]
    scale = 1.0 / math.sqrt(math.sqrt(ch))
    w = jnp.einsum('bct,bcs->bts', q * scale, k * scale)
    w = jax.nn.softmax(w, axis=-1)
    a = jnp.einsum('bts,bcs->bct', w, v).reshape(b, c, t)
    proj = jnp.einsum('oc,bct->bot', proj_w, a) + proj_b[None]
    return (xf + proj).reshape(b, c, *spatial)


if __name__ == "__main__":
    key = jax.random.PRNGKey(0)
    k_x, k_g, k_b, k_qw, k_qb, k_pw, k_pb = jax.random.split(key, 7)

    x = jax.random.normal(k_x, (B, C, HW, HW), dtype=jnp.float32)

    # GroupNorm params (PyTorch init would be ones/zeros; perturb so every term
    # is exercised).
    gamma = (1.0 + 0.1 * jax.random.normal(k_g, (C, 1))).astype(jnp.float32)
    beta = (0.1 * jax.random.normal(k_b, (C, 1))).astype(jnp.float32)

    # qkv: conv_nd(1, C, 3C, 1) -> weight [3C, C], bias [3C, 1]
    qkv_w = (0.2 * jax.random.normal(k_qw, (3 * C, C))).astype(jnp.float32)
    qkv_b = (0.1 * jax.random.normal(k_qb, (3 * C, 1))).astype(jnp.float32)

    # proj_out is zero_module() at PyTorch init; use small nonzero deterministic
    # weights so the attention path is actually exercised by the check.
    proj_w = (0.2 * jax.random.normal(k_pw, (C, C))).astype(jnp.float32)
    proj_b = (0.1 * jax.random.normal(k_pb, (C, 1))).astype(jnp.float32)

    out = attention_block(x, gamma, beta, qkv_w, qkv_b, proj_w, proj_b)
    out = jax.block_until_ready(out)
    assert out.shape == (B, C, HW, HW)

    ref = reference(x, gamma, beta, qkv_w, qkv_b, proj_w, proj_b)
    # Tolerance accounts for the EUP approximate-reciprocal softmax
    # normalization and the one-pass GroupNorm variance; a semantics bug would
    # show up as O(1) error.
    np.testing.assert_allclose(np.asarray(out), np.asarray(ref),
                               rtol=2e-3, atol=2e-3)
    print("KERNEL_OK")
</pallas_src>

<mosaic_0001>
module attributes {stable_mosaic.version = 11 : i64} {
  func.func @attention_block_kernel(%arg0: memref<32x128xf32, #tpu.memory_space<vmem>>, %arg1: memref<32x1xf32, #tpu.memory_space<vmem>>, %arg2: memref<32x1xf32, #tpu.memory_space<vmem>>, %arg3: memref<96x32xf32, #tpu.memory_space<vmem>>, %arg4: memref<96x1xf32, #tpu.memory_space<vmem>>, %arg5: memref<32x32xf32, #tpu.memory_space<vmem>>, %arg6: memref<32x1xf32, #tpu.memory_space<vmem>>, %arg7: memref<32x128xf32, #tpu.memory_space<vmem>>) attributes {dimension_semantics = [], scalar_prefetch = 0 : i64, scratch_operands = 0 : i64, tpu.core_type = #tpu.core_type<tc>} {
    %c0 = arith.constant 0 : index
    %c0_0 = arith.constant 0 : index
    %0 = vector.load %arg0[%c0, %c0_0] : memref<32x128xf32, #tpu.memory_space<vmem>>, vector<32x128xf32>
    %1 = tpu.iota {dimensions = array<i32: 0>} : vector<128x2xi32>
    %2 = tpu.iota {dimensions = array<i32: 1>} : vector<128x2xi32>
    %c64_i32 = arith.constant 64 : i32
    %3 = vector.broadcast %c64_i32 : i32 to vector<128x2xi32>
    %4 = arith.muli %2, %3 : vector<128x2xi32>
    %5 = arith.cmpi sge, %1, %4 : vector<128x2xi32>
    %c1_i32 = arith.constant 1 : i32
    %6 = vector.broadcast %c1_i32 : i32 to vector<128x2xi32>
    %7 = arith.addi %2, %6 : vector<128x2xi32>
    %c64_i32_1 = arith.constant 64 : i32
    %8 = vector.broadcast %c64_i32_1 : i32 to vector<128x2xi32>
    %9 = arith.muli %7, %8 : vector<128x2xi32>
    %10 = arith.cmpi slt, %1, %9 : vector<128x2xi32>
    %11 = arith.andi %5, %10 : vector<128x2xi1>
    %12 = arith.extui %11 : vector<128x2xi1> to vector<128x2xi32>
    %13 = arith.sitofp %12 : vector<128x2xi32> to vector<128x2xf32>
    %14 = tpu.iota {dimensions = array<i32: 1>} : vector<2x128xi32>
    %15 = tpu.iota {dimensions = array<i32: 0>} : vector<2x128xi32>
    %c64_i32_2 = arith.constant 64 : i32
    %16 = vector.broadcast %c64_i32_2 : i32 to vector<2x128xi32>
    %17 = arith.muli %15, %16 : vector<2x128xi32>
    %18 = arith.cmpi sge, %14, %17 : vector<2x128xi32>
    %c1_i32_3 = arith.constant 1 : i32
    %19 = vector.broadcast %c1_i32_3 : i32 to vector<2x128xi32>
    %20 = arith.addi %15, %19 : vector<2x128xi32>
    %c64_i32_4 = arith.constant 64 : i32
    %21 = vector.broadcast %c64_i32_4 : i32 to vector<2x128xi32>
    %22 = arith.muli %20, %21 : vector<2x128xi32>
    %23 = arith.cmpi slt, %14, %22 : vector<2x128xi32>
    %24 = arith.andi %18, %23 : vector<2x128xi1>
    %25 = arith.extui %24 : vector<2x128xi1> to vector<2x128xi32>
    %26 = arith.sitofp %25 : vector<2x128xi32> to vector<2x128xf32>
    %cst = arith.constant dense<0.000000e+00> : vector<32x2xf32>
    %27 = tpu.matmul %0, %13, %cst {dimension_numbers = #tpu.dot_dimension_numbers<[1], [0], [0], [1], [0, 0, 1, 1], [], []>} : vector<32x128xf32>, vector<128x2xf32>, vector<32x2xf32> -> vector<32x2xf32>
    %28 = arith.mulf %0, %0 : vector<32x128xf32>
    %cst_5 = arith.constant dense<0.000000e+00> : vector<32x2xf32>
    %29 = tpu.matmul %28, %13, %cst_5 {dimension_numbers = #tpu.dot_dimension_numbers<[1], [0], [0], [1], [0, 0, 1, 1], [], []>} : vector<32x128xf32>, vector<128x2xf32>, vector<32x2xf32> -> vector<32x2xf32>
    %cst_6 = arith.constant 1.562500e-02 : f32
    %30 = vector.broadcast %cst_6 : f32 to vector<32x2xf32>
    %31 = arith.mulf %27, %30 : vector<32x2xf32>
    %cst_7 = arith.constant 1.562500e-02 : f32
    %32 = vector.broadcast %cst_7 : f32 to vector<32x2xf32>
    %33 = arith.mulf %29, %32 : vector<32x2xf32>
    %34 = arith.mulf %31, %31 : vector<32x2xf32>
    %35 = arith.subf %33, %34 : vector<32x2xf32>
    %cst_8 = arith.constant 9.99999974E-6 : f32
    %36 = vector.broadcast %cst_8 : f32 to vector<32x2xf32>
    %37 = arith.addf %35, %36 : vector<32x2xf32>
    %38 = math.rsqrt %37 : vector<32x2xf32>
    %c0_9 = arith.constant 0 : index
    %c0_10 = arith.constant 0 : index
    %39 = vector.load %arg1[%c0_9, %c0_10] : memref<32x1xf32, #tpu.memory_space<vmem>>, vector<32x1xf32>
    %40 = vector.broadcast %39 : vector<32x1xf32> to vector<32x2xf32>
    %41 = arith.mulf %40, %38 : vector<32x2xf32>
    %c0_11 = arith.constant 0 : index
    %c0_12 = arith.constant 0 : index
    %42 = vector.load %arg2[%c0_11, %c0_12] : memref<32x1xf32, #tpu.memory_space<vmem>>, vector<32x1xf32>
    %43 = arith.mulf %31, %41 : vector<32x2xf32>
    %44 = vector.broadcast %42 : vector<32x1xf32> to vector<32x2xf32>
    %45 = arith.subf %44, %43 : vector<32x2xf32>
    %cst_13 = arith.constant dense<0.000000e+00> : vector<32x128xf32>
    %46 = tpu.matmul %41, %26, %cst_13 {dimension_numbers = #tpu.dot_dimension_numbers<[1], [0], [0], [1], [0, 0, 1, 1], [], []>} : vector<32x2xf32>, vector<2x128xf32>, vector<32x128xf32> -> vector<32x128xf32>
    %47 = arith.mulf %0, %46 : vector<32x128xf32>
    %cst_14 = arith.constant dense<0.000000e+00> : vector<32x128xf32>
    %48 = tpu.matmul %45, %26, %cst_14 {dimension_numbers = #tpu.dot_dimension_numbers<[1], [0], [0], [1], [0, 0, 1, 1], [], []>} : vector<32x2xf32>, vector<2x128xf32>, vector<32x128xf32> -> vector<32x128xf32>
    %49 = arith.addf %47, %48 : vector<32x128xf32>
    %c0_15 = arith.constant 0 : index
    %c0_16 = arith.constant 0 : index
    %50 = vector.load %arg3[%c0_15, %c0_16] : memref<96x32xf32, #tpu.memory_space<vmem>>, vector<96x32xf32>
    %cst_17 = arith.constant dense<0.000000e+00> : vector<96x128xf32>
    %51 = tpu.matmul %50, %49, %cst_17 {dimension_numbers = #tpu.dot_dimension_numbers<[1], [0], [0], [1], [0, 0, 1, 1], [], []>} : vector<96x32xf32>, vector<32x128xf32>, vector<96x128xf32> -> vector<96x128xf32>
    %c0_18 = arith.constant 0 : index
    %c0_19 = arith.constant 0 : index
    %52 = vector.load %arg4[%c0_18, %c0_19] : memref<96x1xf32, #tpu.memory_space<vmem>>, vector<96x1xf32>
    %53 = vector.broadcast %52 : vector<96x1xf32> to vector<96x128xf32>
    %54 = arith.addf %51, %53 : vector<96x128xf32>
    %55 = vector.extract_strided_slice %54 {offsets = [0, 0], sizes = [32, 128], strides = [1, 1]} : vector<96x128xf32> to vector<32x128xf32>
    %56 = vector.shape_cast %55 : vector<32x128xf32> to vector<4x8x128xf32>
    %57 = vector.extract_strided_slice %54 {offsets = [32, 0], sizes = [32, 128], strides = [1, 1]} : vector<96x128xf32> to vector<32x128xf32>
    %58 = vector.shape_cast %57 : vector<32x128xf32> to vector<4x8x128xf32>
    %59 = vector.extract_strided_slice %54 {offsets = [64, 0], sizes = [32, 128], strides = [1, 1]} : vector<96x128xf32> to vector<32x128xf32>
    %60 = vector.shape_cast %59 : vector<32x128xf32> to vector<4x8x128xf32>
    %cst_20 = arith.constant dense<0.000000e+00> : vector<4x128x128xf32>
    %61 = tpu.matmul %56, %58, %cst_20 {dimension_numbers = #tpu.dot_dimension_numbers<[1], [1], [2], [2], [0, 0, 0, 2, 1, 2], [0], [0]>} : vector<4x8x128xf32>, vector<4x8x128xf32>, vector<4x128x128xf32> -> vector<4x128x128xf32>
    %cst_21 = arith.constant dense<0.000000e+00> : vector<128x128xf32>
    %62 = tpu.matmul %13, %26, %cst_21 {dimension_numbers = #tpu.dot_dimension_numbers<[1], [0], [0], [1], [0, 0, 1, 1], [], []>} : vector<128x2xf32>, vector<2x128xf32>, vector<128x128xf32> -> vector<128x128xf32>
    %cst_22 = arith.constant 0.000000e+00 : f32
    %63 = vector.broadcast %cst_22 : f32 to vector<128x128xf32>
    %64 = arith.cmpf ogt, %62, %63 : vector<128x128xf32>
    %65 = vector.shape_cast %64 : vector<128x128xi1> to vector<1x128x128xi1>
    %cst_23 = arith.constant -1.000000e+30 : f32
    %66 = vector.shape_cast %65 : vector<1x128x128xi1> to vector<1x128x128xi1>
    %67 = vector.broadcast %66 : vector<1x128x128xi1> to vector<4x128x128xi1>
    %68 = vector.broadcast %cst_23 : f32 to vector<4x128x128xf32>
    %69 = arith.select %67, %61, %68 : vector<4x128x128xi1>, vector<4x128x128xf32>
    %cst_24 = arith.constant dense<0xFF800000> : vector<4x128xf32>
    %70 = vector.multi_reduction <maximumf>, %69, %cst_24 [2] : vector<4x128x128xf32> to vector<4x128xf32>
    %71 = vector.shape_cast %70 : vector<4x128xf32> to vector<4x128x1xf32>
    %72 = vector.broadcast %71 : vector<4x128x1xf32> to vector<4x128x128xf32>
    %73 = arith.subf %69, %72 : vector<4x128x128xf32>
    %74 = math.exp %73 : vector<4x128x128xf32>
    %cst_25 = arith.constant dense<0.000000e+00> : vector<4x128xf32>
    %75 = vector.multi_reduction <add>, %74, %cst_25 [2] : vector<4x128x128xf32> to vector<4x128xf32>
    %76 = vector.shape_cast %75 : vector<4x128xf32> to vector<4x128x1xf32>
    %77 = tpu.reciprocal %76 {approx = true} : vector<4x128x1xf32> -> vector<4x128x1xf32>
    %78 = vector.broadcast %77 : vector<4x128x1xf32> to vector<4x128x128xf32>
    %79 = arith.mulf %74, %78 : vector<4x128x128xf32>
    %cst_26 = arith.constant dense<0.000000e+00> : vector<4x8x128xf32>
    %80 = tpu.matmul %60, %79, %cst_26 {dimension_numbers = #tpu.dot_dimension_numbers<[2], [2], [1], [1], [0, 0, 0, 1, 1, 1], [0], [0]>} : vector<4x8x128xf32>, vector<4x128x128xf32>, vector<4x8x128xf32> -> vector<4x8x128xf32>
    %81 = vector.shape_cast %80 : vector<4x8x128xf32> to vector<32x128xf32>
    %c0_27 = arith.constant 0 : index
    %c0_28 = arith.constant 0 : index
    %82 = vector.load %arg5[%c0_27, %c0_28] : memref<32x32xf32, #tpu.memory_space<vmem>>, vector<32x32xf32>
    %cst_29 = arith.constant dense<0.000000e+00> : vector<32x128xf32>
    %83 = tpu.matmul %82, %81, %cst_29 {dimension_numbers = #tpu.dot_dimension_numbers<[1], [0], [0], [1], [0, 0, 1, 1], [], []>} : vector<32x32xf32>, vector<32x128xf32>, vector<32x128xf32> -> vector<32x128xf32>
    %c0_30 = arith.constant 0 : index
    %c0_31 = arith.constant 0 : index
    %84 = vector.load %arg6[%c0_30, %c0_31] : memref<32x1xf32, #tpu.memory_space<vmem>>, vector<32x1xf32>
    %85 = vector.broadcast %84 : vector<32x1xf32> to vector<32x128xf32>
    %86 = arith.addf %83, %85 : vector<32x128xf32>
    %87 = arith.addf %0, %86 : vector<32x128xf32>
    %c0_32 = arith.constant 0 : index
    %c0_33 = arith.constant 0 : index
    %88 = vector.load %arg7[%c0_32, %c0_33] : memref<32x128xf32, #tpu.memory_space<vmem>>, vector<32x128xf32>
    tpu.vector_store %arg7[%c0_32, %c0_33], %87 {strides = array<i32>} : memref<32x128xf32, #tpu.memory_space<vmem>>, vector<32x128xf32>,
    return
  }
}

</mosaic_0001>

<bundles_post_ra>
// kernel: tpu_custom_call.1
= control target key start
LH: loop header
LB: loop body
LE: loop exit
PB: predicated region body
PF: predicated region fallthrough
CT: control target
= control target key end

     0   :  { %v31_v0 = vlaneseq  ;;  %v4147_v3 = vmov 0   ;;  %s5941_s0 = inlined_call_operand.vmem [shape: f32[32,128], index: 0, kind: input, shape index: {}]   ;;  %s5942_s1 = inlined_call_operand.vmem [shape: f32[32,1], index: 1, kind: input, shape index: {}]   ;;  %s5943_s2 = inlined_call_operand.vmem [shape: f32[32,1], index: 2, kind: input, shape index: {}]   ;;  %s5944_s3 = inlined_call_operand.vmem [shape: f32[96,32], index: 3, kind: input, shape index: {}]   ;;  %s5945_s4 = inlined_call_operand.vmem [shape: f32[96,1], index: 4, kind: input, shape index: {}]   ;;  %s5946_s5 = inlined_call_operand.vmem [shape: f32[32,32], index: 5, kind: input, shape index: {}]   ;;  %s5947_s6 = inlined_call_operand.vmem [shape: f32[32,1], index: 6, kind: input, shape index: {}]   ;;  %s5948_s7 = inlined_call_operand.hbm [shape: f32[32,128], index: 7, kind: output, shape index: {}]  }
   0x1   :  { %v4197_v1 = vld [vmem:[%s5941_s0] sm:$0xff]  ;;  %3855 = vset.pattern.permute.xlu0 %v4147_v3  ;;  %3856 = vset.pattern.permute.xlu1 %v4147_v3  ;;  %v341_v7 = vld [vmem:[%s5942_s1 + $0x10] sm:$0xff]  ;;  %v340_v8 = vld [vmem:[%s5942_s1 + $0x8] sm:$0xff] }
   0x2   :  { %3478 = vmatprep.mubr.f32.mxu0 %v4197_v1  ;;  %v226_v2 = vmul.f32 %v4197_v1, %v4197_v1  ;;  %v339_v4 = vld [vmem:[%s5942_s1] sm:$0xff]  ;;  %v4205_v5 = vshrl.u32 %v31_v0, 7  ;;  %v4207_v6 = vand.u32 127, %v31_v0  ;;  %355 = vperm.xlu1 %3856, %v341_v7  }
   0x3   :  { %345 = vperm.xlu0 %3855, %v339_v4   ;;  %v367_v13 = vld [vmem:[%s5943_s2] sm:$0xff] }
   0x4   :  { %3516 = vmatprep.mubr.f32.mxu1 %v226_v2  ;;  %v47_v9 = vadd.s32 120, %v4205_v5  ;;  %v4217_v10 = vmul.u32 64, %v4207_v6  ;;  %v67_v11 = vadd.s32 1, %v4207_v6  ;;  %v46_v12 = vadd.s32 112, %v4205_v5 }
   0x5   :  { %v45_v14 = vadd.s32 104, %v4205_v5  ;;  %v44_v16 = vadd.s32 96, %v4205_v5 }
   0x6   :  { %vm66_vm0 = vcmp.ge.s32.totalorder %v47_v9, %v4217_v10  ;;  %v4226_v15 = vmul.u32 64, %v67_v11 }
   0x7   :  { %350 = vperm.xlu0 %3855, %v340_v8  }
   0x8   :  { %12 = vsyncpa [#allocation3], 0  ;;  %vm65_vm1 = vcmp.ge.s32.totalorder %v46_v12, %v4217_v10  ;;  %v43_v17 = vadd.s32 88, %v4205_v5  ;;  %377 = vperm.xlu1 %3856, %v367_v13   ;;  %vm84_vm2 = vcmp.lt.s32.totalorder %v47_v9, %v4226_v15  ;;  %vm83_vm3 = vcmp.lt.s32.totalorder %v46_v12, %v4226_v15  ;;  %v4492_v44 = vld [vmem:[%s5941_s0 + $0x8] sm:$0xff]  ;;  %v4503_v45 = vld [vmem:[%s5941_s0 + $0x10] sm:$0xff] }
   0x9   :  { %vm64_vm4 = vcmp.ge.s32.totalorder %v45_v14, %v4217_v10  ;;  %vm82_vm5 = vcmp.lt.s32.totalorder %v45_v14, %v4226_v15  ;;  %vm4235_vm6 = vmand %vm66_vm0, %vm84_vm2  ;;  %v6003_v18 = vmov 0  ;;  %v4148_v19 = vmov 1.0   ;;  %v4534_v49 = vld [vmem:[%s5941_s0 + $0x18] sm:$0xff]  ;;  %v368_v51 = vld [vmem:[%s5943_s2 + $0x8] sm:$0xff] }
   0xa   :  { %v6004_v18 = vsel %vm4235_vm6, 4294967295, %v6003_v18  ;;  %3446 = vmatprep.subr.msk.mxu0 %vm4235_vm6, %v4148_v19  ;;  %3484 = vmatprep.subr.msk.mxu1 %vm4235_vm6, %v4148_v19  ;;  %vm4245_vm7 = vmand %vm65_vm1, %vm83_vm3  ;;  %v6005_v20 = vmov 0  ;;  %vm63_vm8 = vcmp.ge.s32.totalorder %v44_v16, %v4217_v10  ;;  %vm81_vm9 = vcmp.lt.s32.totalorder %v44_v16, %v4226_v15  ;;  %v342_v50 = vld [vmem:[%s5942_s1 + $0x18] sm:$0xff]  ;;  %v369_v53 = vld [vmem:[%s5943_s2 + $0x10] sm:$0xff] }
   0xb   :  { %v6006_v20 = vsel %vm4245_vm7, 4294967295, %v6005_v20  ;;  %v42_v21 = vadd.s32 80, %v4205_v5  ;;  %3447 = vmatpush3.msk.msra.mxu0 %vm4235_vm6, %v4148_v19  ;;  %3485 = vmatpush3.msk.msra.mxu1 %vm4235_vm6, %v4148_v19  ;;  %vm4258_vm10 = vmand %vm64_vm4, %vm82_vm5  ;;  %v6007_v22 = vmov 0  ;;  %vm62_vm11 = vcmp.ge.s32.totalorder %v43_v17, %v4217_v10  ;;  %v370_v54 = vld [vmem:[%s5943_s2 + $0x18] sm:$0xff]  ;;  %v618_v55 = vld [vmem:[%s5945_s4] sm:$0xff] }
   0xc   :  { %v6008_v22 = vsel %vm4258_vm10, 4294967295, %v6007_v22  ;;  %3448 = vmatprep.subr.msk.mxu0 %vm4245_vm7, %v4148_v19  ;;  %3486 = vmatprep.subr.msk.mxu1 %vm4245_vm7, %v4148_v19  ;;  %vm80_vm12 = vcmp.lt.s32.totalorder %v43_v17, %v4226_v15  ;;  %v41_v23 = vadd.s32 72, %v4205_v5  ;;  %vm4277_vm13 = vmand %vm63_vm8, %vm81_vm9  ;;  %v6009_v24 = vmov 0  ;;  %v620_v56 = vld [vmem:[%s5945_s4 + $0x10] sm:$0xff]  ;;  %v622_v57 = vld [vmem:[%s5945_s4 + $0x20] sm:$0xff] }
   0xd   :  { %3449 = vmatpush3.msk.msra.mxu0 %vm4245_vm7, %v4148_v19  ;;  %3487 = vmatpush3.msk.msra.mxu1 %vm4245_vm7, %v4148_v19  ;;  %v6010_v24 = vsel %vm4277_vm13, 4294967295, %v6009_v24  ;;  %vm61_vm14 = vcmp.ge.s32.totalorder %v42_v21, %v4217_v10  ;;  %vm79_vm15 = vcmp.lt.s32.totalorder %v42_v21, %v4226_v15  ;;  %v40_v25 = vadd.s32 64, %v4205_v5  ;;  %vm4296_vm0 = vmand %vm62_vm11, %vm80_vm12  ;;  %v619_v58 = vld [vmem:[%s5945_s4 + $0x8] sm:$0xff]  ;;  %v624_v59 = vld [vmem:[%s5945_s4 + $0x30] sm:$0xff] }
   0xe   :  { %3450 = vmatprep.subr.msk.mxu0 %vm4258_vm10, %v4148_v19  ;;  %3488 = vmatprep.subr.msk.mxu1 %vm4258_vm10, %v4148_v19  ;;  %vm60_vm1 = vcmp.ge.s32.totalorder %v41_v23, %v4217_v10  ;;  %vm78_vm2 = vcmp.lt.s32.totalorder %v41_v23, %v4226_v15  ;;  %v39_v27 = vadd.s32 56, %v4205_v5  ;;  %vm4315_vm3 = vmand %vm61_vm14, %vm79_vm15  ;;  %v38_v29 = vadd.s32 48, %v4205_v5  ;;  %v623_v60 = vld [vmem:[%s5945_s4 + $0x28] sm:$0xff] }
   0xf   :  { %3451 = vmatpush3.msk.msra.mxu0 %vm4258_vm10, %v4148_v19  ;;  %3489 = vmatpush3.msk.msra.mxu1 %vm4258_vm10, %v4148_v19  ;;  %vm59_vm4 = vcmp.ge.s32.totalorder %v40_v25, %v4217_v10  ;;  %vm77_vm5 = vcmp.lt.s32.totalorder %v40_v25, %v4226_v15  ;;  %vm4334_vm8 = vmand %vm60_vm1, %vm78_vm2  ;;  %v37_v31 = vadd.s32 40, %v4205_v5  ;;  %v36_v33 = vadd.s32 32, %v4205_v5 }
  0x10   :  { %3452 = vmatprep.subr.msk.mxu0 %vm4277_vm13, %v4148_v19  ;;  %3490 = vmatprep.subr.msk.mxu1 %vm4277_vm13, %v4148_v19  ;;  %vm58_vm9 = vcmp.ge.s32.totalorder %v39_v27, %v4217_v10  ;;  %vm76_vm11 = vcmp.lt.s32.totalorder %v39_v27, %v4226_v15  ;;  %vm4353_vm12 = vmand %vm59_vm4, %vm77_vm5  ;;  %vm57_vm14 = vcmp.ge.s32.totalorder %v38_v29, %v4217_v10  ;;  %v35_v35 = vadd.s32 24, %v4205_v5 }
  0x11   :  { %3453 = vmatpush3.msk.msra.mxu0 %vm4277_vm13, %v4148_v19  ;;  %3491 = vmatpush3.msk.msra.mxu1 %vm4277_vm13, %v4148_v19  ;;  %vm75_vm15 = vcmp.lt.s32.totalorder %v38_v29, %v4226_v15  ;;  %vm4372_vm1 = vmand %vm58_vm9, %vm76_vm11  ;;  %vm56_vm2 = vcmp.ge.s32.totalorder %v37_v31, %v4217_v10  ;;  %vm74_vm4 = vcmp.lt.s32.totalorder %v37_v31, %v4226_v15  ;;  %v34_v37 = vadd.s32 16, %v4205_v5 }
  0x12   :  { %3454 = vmatprep.subr.msk.mxu0 %vm4296_vm0, %v4148_v19  ;;  %3492 = vmatprep.subr.msk.mxu1 %vm4296_vm0, %v4148_v19  ;;  %vm4391_vm5 = vmand %vm57_vm14, %vm75_vm15  ;;  %vm55_vm9 = vcmp.ge.s32.totalorder %v36_v33, %v4217_v10  ;;  %vm73_vm11 = vcmp.lt.s32.totalorder %v36_v33, %v4226_v15  ;;  %vm54_vm15 = vcmp.ge.s32.totalorder %v35_v35, %v4217_v10  ;;  %v33_v39 = vadd.s32 8, %v4205_v5 }
  0x13   :  { %3455 = vmatpush3.msk.msra.mxu0 %vm4296_vm0, %v4148_v19  ;;  %3493 = vmatpush3.msk.msra.mxu1 %vm4296_vm0, %v4148_v19  ;;  %vm4410_vm14 = vmand %vm56_vm2, %vm74_vm4  ;;  %vm72_vm6 = vcmp.lt.s32.totalorder %v35_v35, %v4226_v15  ;;  %vm53_vm4 = vcmp.ge.s32.totalorder %v34_v37, %v4217_v10  ;;  %vm71_vm7 = vcmp.lt.s32.totalorder %v34_v37, %v4226_v15  ;;  %v135_v61 = vadd.s32 1, %v4205_v5 }
  0x14   :  { %3456 = vmatprep.subr.msk.mxu0 %vm4315_vm3, %v4148_v19  ;;  %3494 = vmatprep.subr.msk.mxu1 %vm4315_vm3, %v4148_v19  ;;  %vm4429_vm2 = vmand %vm55_vm9, %vm73_vm11  ;;  %vm52_vm11 = vcmp.ge.s32.totalorder %v33_v39, %v4217_v10  ;;  %vm70_vm10 = vcmp.lt.s32.totalorder %v33_v39, %v4226_v15  ;;  %vm69_vm13 = vcmp.lt.s32.totalorder %v4205_v5, %v4226_v15  ;;  %v133_v62 = vmul.u32 64, %v4205_v5 }
  0x15   :  { %3457 = vmatpush3.msk.msra.mxu0 %vm4315_vm3, %v4148_v19  ;;  %3495 = vmatpush3.msk.msra.mxu1 %vm4315_vm3, %v4148_v19  ;;  %vm4447_vm9 = vmand %vm54_vm15, %vm72_vm6  ;;  %vm51_vm15 = vcmp.ge.s32.totalorder %v4205_v5, %v4217_v10  ;;  %v227_v47 = vmul.f32 %v4492_v44, %v4492_v44  ;;  %v228_v48 = vmul.f32 %v4503_v45, %v4503_v45  ;;  %v136_v63 = vmul.u32 64, %v135_v61 }
  0x16   :  { %3458 = vmatprep.subr.msk.mxu0 %vm4334_vm8, %v4148_v19  ;;  %3496 = vmatprep.subr.msk.mxu1 %vm4334_vm8, %v4148_v19  ;;  %vm4465_vm6 = vmand %vm53_vm4, %vm71_vm7  ;;  %v229_v52 = vmul.f32 %v4534_v49, %v4534_v49  ;;  %v5953_v0 = vmov 0.0  }
  0x17   :  { %3459 = vmatpush3.msk.msra.mxu0 %vm4334_vm8, %v4148_v19  ;;  %3497 = vmatpush3.msk.msra.mxu1 %vm4334_vm8, %v4148_v19  ;;  %vm4485_vm7 = vmand %vm52_vm11, %vm70_vm10  ;;  %vm137_vm4 = vcmp.lt.s32.totalorder %v4207_v6, %v136_v63  ;;  %v3066_v46 = vsel %vm4447_vm9, 1.0, %v5953_v0  ;;  %v3068_v42 = vsel %vm4410_vm14, 1.0, %v5953_v0  ;;  %v3069_v43 = vsel %vm4391_vm5, 1.0, %v5953_v0 }
  0x18   :  { %3460 = vmatprep.subr.msk.mxu0 %vm4353_vm12, %v4148_v19  ;;  %3498 = vmatprep.subr.msk.mxu1 %vm4353_vm12, %v4148_v19  ;;  %vm4511_vm10 = vmand %vm51_vm15, %vm69_vm13  ;;  %vm134_vm13 = vcmp.ge.s32.totalorder %v4207_v6, %v133_v62  ;;  %vm412_vm15 = vcmask 1041408   ;;  %v3070_v40 = vsel %vm4372_vm1, 1.0, %v5953_v0  ;;  %v3071_v38 = vsel %vm4353_vm12, 1.0, %v5953_v0 }
  0x19   :  { %3461 = vmatpush3.msk.msra.mxu0 %vm4353_vm12, %v4148_v19  ;;  %3499 = vmatpush3.msk.msra.mxu1 %vm4353_vm12, %v4148_v19  ;;  %vm138_vm11 = vmand %vm134_vm13, %vm137_vm4  ;;  %vm399_vm13 = vcmask 15360   ;;  %vm5956_vm4 = vcmask 261120   ;;  %v3072_v36 = vsel %vm4334_vm8, 1.0, %v5953_v0  ;;  %v3074_v32 = vsel %vm4296_vm0, 1.0, %v5953_v0 }
  0x1a   :  { %3462 = vmatprep.subr.msk.mxu0 %vm4372_vm1, %v4148_v19  ;;  %3500 = vmatprep.subr.msk.mxu1 %vm4372_vm1, %v4148_v19  ;;  %v4588_v2 = vsel %vm138_vm11, 1.0, %v5953_v0  ;;  %vm884_vm11 = vcmask 64512   ;;  %vm6035_vm12 = vnez %v6010_v24  ;;  %vm6036_vm8 = vnez %v6008_v22 }
  0x1b   :  { %3463 = vmatpush3.msk.msra.mxu0 %vm4372_vm1, %v4148_v19  ;;  %3501 = vmatpush3.msk.msra.mxu1 %vm4372_vm1, %v4148_v19  ;;  %v3075_v34 = vsel %vm6035_vm12, 1.0, %v5953_v0  ;;  %v3076_v28 = vsel %vm6036_vm8, 1.0, %v5953_v0  ;;  %vm6038_vm0 = vnez %v6004_v18 }
  0x1c   :  { %3464 = vmatprep.subr.msk.mxu0 %vm4391_vm5, %v4148_v19  ;;  %3502 = vmatprep.subr.msk.mxu1 %vm4391_vm5, %v4148_v19  ;;  %v3078_v24 = vsel %vm6038_vm0, 1.0, %v5953_v0 }
  0x1d   :  { %3465 = vmatpush3.msk.msra.mxu0 %vm4391_vm5, %v4148_v19  ;;  %3503 = vmatpush3.msk.msra.mxu1 %vm4391_vm5, %v4148_v19 }
  0x1e   :  { %3466 = vmatprep.subr.msk.mxu0 %vm4410_vm14, %v4148_v19  ;;  %3504 = vmatprep.subr.msk.mxu1 %vm4410_vm14, %v4148_v19 }
  0x1f   :  { %3467 = vmatpush3.msk.msra.mxu0 %vm4410_vm14, %v4148_v19  ;;  %3505 = vmatpush3.msk.msra.mxu1 %vm4410_vm14, %v4148_v19 }
  0x20   :  { %3468 = vmatprep.subr.msk.mxu0 %vm4429_vm2, %v4148_v19  ;;  %3506 = vmatprep.subr.msk.mxu1 %vm4429_vm2, %v4148_v19 }
  0x21   :  { %3469 = vmatpush3.msk.msra.mxu0 %vm4429_vm2, %v4148_v19  ;;  %3507 = vmatpush3.msk.msra.mxu1 %vm4429_vm2, %v4148_v19 }
  0x22   :  { %3470 = vmatprep.subr.msk.mxu0 %vm4447_vm9, %v4148_v19  ;;  %3508 = vmatprep.subr.msk.mxu1 %vm4447_vm9, %v4148_v19 }
  0x23   :  { %3471 = vmatpush3.msk.msra.mxu0 %vm4447_vm9, %v4148_v19  ;;  %3509 = vmatpush3.msk.msra.mxu1 %vm4447_vm9, %v4148_v19 }
  0x24   :  { %3472 = vmatprep.subr.msk.mxu0 %vm4465_vm6, %v4148_v19  ;;  %3510 = vmatprep.subr.msk.mxu1 %vm4465_vm6, %v4148_v19 }
  0x25   :  { %3473 = vmatpush3.msk.msra.mxu0 %vm4465_vm6, %v4148_v19  ;;  %3511 = vmatpush3.msk.msra.mxu1 %vm4465_vm6, %v4148_v19 }
  0x26   :  { %3474 = vmatprep.subr.msk.mxu0 %vm4485_vm7, %v4148_v19  ;;  %3512 = vmatprep.subr.msk.mxu1 %vm4485_vm7, %v4148_v19 }
  0x27   :  { %3475 = vmatpush3.msk.msra.mxu0 %vm4485_vm7, %v4148_v19  ;;  %3513 = vmatpush3.msk.msra.mxu1 %vm4485_vm7, %v4148_v19 }
  0x28   :  { %3476 = vmatprep.subr.msk.mxu0 %vm4511_vm10, %v4148_v19  ;;  %3514 = vmatprep.subr.msk.mxu1 %vm4511_vm10, %v4148_v19 }
  0x29   :  { %3477 = vmatpush3.msk.msra.mxu0 %vm4511_vm10, %v4148_v19  ;;  %3515 = vmatpush3.msk.msra.mxu1 %vm4511_vm10, %v4148_v19 }
  0x2a   :  { %3479 = vmatmul.mubr.f32.vlgmr.msra.gmra.mxu0 %v4492_v44  ;;  %3517 = vmatmul.mubr.f32.vlgmr.msra.gmra.mxu1 %v227_v47 }
  0x2b   :  { %3481 = vmatprep.mubr.f32.mxu0 %v4503_v45  ;;  %3519 = vmatprep.mubr.f32.mxu1 %v228_v48 }
  0x2c   :  { %360 = vperm.xlu0 %3855, %v342_v50   ;;  %382 = vperm.xlu1 %3856, %v368_v51  }
  0x2d   :  { %3522 = vmatprep.subr.msk.mxu0 %vm412_vm15, %v4588_v2  ;;  %3530 = vmatprep.subr.msk.mxu1 %vm412_vm15, %v4588_v2 }
  0x2e   :  { %3482 = vmatmul.mubr.f32.gmra.mxu0 %v4534_v49  ;;  %3520 = vmatmul.mubr.f32.gmra.mxu1 %v229_v52 }
  0x2f   :  { %3523 = vmatpush3.msk.msra.mxu0 %vm412_vm15, %v4588_v2  ;;  %3531 = vmatpush3.msk.msra.mxu1 %vm412_vm15, %v4588_v2 }
  0x30   :  { %387 = vperm.xlu0 %3855, %v369_v53   ;;  %392 = vperm.xlu1 %3856, %v370_v54  }
  0x34   :  { %632 = vperm.xlu0 %3855, %v618_v55   ;;  %642 = vperm.xlu1 %3856, %v620_v56  }
  0x38   :  { %652 = vperm.xlu0 %3855, %v622_v57   ;;  %637 = vperm.xlu1 %3856, %v619_v58  }
  0x3c   :  { %662 = vperm.xlu0 %3855, %v624_v59  }
  0x40   :  { %657 = vperm.xlu0 %3855, %v623_v60  }
  0x7d   :  { %v356_v51 = vpop.permute.xlu1 %355 }
  0x7e   :  { %v346_v50 = vpop.permute.xlu0 %345 }
  0x82   :  { %v351_v52 = vpop.permute.xlu0 %350 }
  0x83   :  { %v378_v53 = vpop.permute.xlu1 %377 }
  0xa7   :  { %v361_v59 = vpop.permute.xlu0 %360  ;;  %v383_v62 = vpop.permute.xlu1 %382 }
  0xea   :  { %v3480_v3 = vpop.f32.mrf.mxu0  ;;  %v3518_v4 = vpop.f32.mrf.mxu1 }
  0xeb   :  { %v316_v5 = vmul.f32 0.015625, %v3480_v3  ;;  %v320_v6 = vmul.f32 0.015625, %v3518_v4 }
  0xec   :  { %v207_v7 = vpop.f32.mrf.mxu0  ;;  %v296_v8 = vpop.f32.mrf.mxu1 }
  0xed   :  { %v324_v9 = vmul.f32 %v316_v5, %v316_v5  ;;  %v315_v10 = vmul.f32 0.015625, %v207_v7  ;;  %v319_v11 = vmul.f32 0.015625, %v296_v8 }
  0xee   :  { %v3483_v12 = vpop.f32.mrf.mxu0  ;;  %v3521_v13 = vpop.f32.mrf.mxu1 }
  0xef   :  { %v328_v14 = vsub.f32 %v320_v6, %v324_v9  ;;  %v323_v15 = vmul.f32 %v315_v10, %v315_v10  ;;  %v318_v16 = vmul.f32 0.015625, %v3483_v12  ;;  %v322_v17 = vmul.f32 0.015625, %v3521_v13  ;;  %v606_v13 = vld [vmem:[%s5944_s3] sm:$0xff] }
  0xf0   :  { %v217_v19 = vpop.f32.mrf.mxu0  ;;  %v306_v21 = vpop.f32.mrf.mxu1 }
  0xf1   :  { %v332_v23 = vadd.f32 1e-05, %v328_v14  ;;  %v327_v25 = vsub.f32 %v319_v11, %v323_v15  ;;  %v326_v27 = vmul.f32 %v318_v16, %v318_v16  ;;  %v317_v29 = vmul.f32 0.015625, %v217_v19  ;;  %v388_v11 = vpop.permute.xlu0 %387 }
  0xf2   :  { %v321_v31 = vmul.f32 0.015625, %v306_v21 }
  0xf3   :  { %3857 = vrsqrt.f32 %v332_v23  ;;  %v331_v33 = vadd.f32 1e-05, %v327_v25  ;;  %v330_v35 = vsub.f32 %v322_v17, %v326_v27  ;;  %v325_v37 = vmul.f32 %v317_v29, %v317_v29 }
  0xf5   :  { %3859 = vrsqrt.f32 %v331_v33  ;;  %v334_v39 = vadd.f32 1e-05, %v330_v35  ;;  %v329_v47 = vsub.f32 %v321_v31, %v325_v37 }
  0xf7   :  { %3861 = vrsqrt.f32 %v334_v39  ;;  %v333_v48 = vadd.f32 1e-05, %v329_v47 }
  0xf9   :  { %3863 = vrsqrt.f32 %v333_v48  ;;  %v611_v48 = vld [vmem:[%s5944_s3 + $0x28] sm:$0xff] }
 0x100   :  { %v3858_v54 = vpop.eup %3857 }
 0x101   :  { %v364_v55 = vmul.f32 %v3858_v54, %v351_v52  ;;  %v633_v52 = vpop.permute.xlu0 %632 }
 0x102   :  { %v3860_v56 = vpop.eup %3859 }
 0x103   :  { %v363_v57 = vmul.f32 %v3860_v56, %v346_v50  ;;  %v372_v60 = vmul.f32 %v364_v55, %v316_v5  ;;  %v393_v5 = vpop.permute.xlu1 %392  ;;  %v612_v50 = vld [vmem:[%s5944_s3 + $0x30] sm:$0xff] }
 0x104   :  { %v3862_v58 = vpop.eup %3861 }
 0x105   :  { %v371_v61 = vmul.f32 %v363_v57, %v315_v10  ;;  %v366_v63 = vmul.f32 %v3862_v58, %v361_v59  ;;  %3524 = vmatprep.mubr.msk.f32.mxu0 %vm399_vm13, %v363_v57  ;;  %v396_v7 = vsub.f32 %v383_v62, %v372_v60 }
 0x106   :  { %v3864_v3 = vpop.eup %3863  ;;  %3525 = vmatmul.mubr.msk.f32.vlgmr.msra.gmra.mxu0 %vm399_vm13, %v364_v55 }
 0x107   :  { %v395_v4 = vsub.f32 %v378_v53, %v371_v61  ;;  %v365_v6 = vmul.f32 %v3864_v3, %v356_v51  ;;  %v374_v8 = vmul.f32 %v366_v63, %v318_v16  ;;  %v613_v51 = vld [vmem:[%s5944_s3 + $0x38] sm:$0xff]  ;;  %v653_v53 = vpop.permute.xlu0 %652  ;;  %v643_v59 = vpop.permute.xlu1 %642 }
 0x109   :  { %3527 = vmatprep.mubr.msk.f32.mxu0 %vm399_vm13, %v365_v6  ;;  %3532 = vmatprep.mubr.msk.f32.mxu1 %vm399_vm13, %v395_v4  ;;  %v373_v9 = vmul.f32 %v365_v6, %v317_v29  ;;  %v398_v12 = vsub.f32 %v393_v5, %v374_v8  ;;  %v625_v5 = vld [vmem:[%s5945_s4 + $0x38] sm:$0xff] }
 0x10a   :  { %3528 = vmatmul.mubr.msk.f32.gmra.mxu0 %vm399_vm13, %v366_v63  ;;  %3533 = vmatmul.mubr.msk.f32.vlgmr.msra.gmra.mxu1 %vm399_vm13, %v396_v7 }
 0x10b   :  { %v397_v10 = vsub.f32 %v388_v11, %v373_v9  ;;  %3546 = vmatprep.mubr.msk.f32.mxu0 %vm5956_vm4, %v606_v13  ;;  %v663_v55 = vpop.permute.xlu0 %662  ;;  %v621_v11 = vld [vmem:[%s5945_s4 + $0x18] sm:$0xff]  ;;  %v615_v13 = vld [vmem:[%s5944_s3 + $0x48] sm:$0xff] }
 0x10d   :  { %3535 = vmatprep.mubr.msk.f32.mxu1 %vm399_vm13, %v397_v10  ;;  %v638_v10 = vpop.permute.xlu1 %637 }
 0x10e   :  { %3536 = vmatmul.mubr.msk.f32.gmra.mxu1 %vm399_vm13, %v398_v12  ;;  %v614_v12 = vld [vmem:[%s5944_s3 + $0x40] sm:$0xff] }
 0x10f   :  { %v658_v62 = vpop.permute.xlu0 %657 }
 0x1c6   :  { %v3526_v14 = vpop.f32.mrf.mxu0 }
 0x1c7   :  { %v502_v33 = vmul.f32 %v3526_v14, %v4492_v44  ;;  %v608_v44 = vld [vmem:[%s5944_s3 + $0x10] sm:$0xff] }
 0x1c8   :  { %v482_v15 = vpop.f32.mrf.mxu0  ;;  %v616_v14 = vld [vmem:[%s5944_s3 + $0x50] sm:$0xff] }
 0x1c9   :  { %v501_v37 = vmul.f32 %v482_v15, %v4197_v1  ;;  %v609_v1 = vld [vmem:[%s5944_s3 + $0x18] sm:$0xff] }
 0x1ca   :  { %v3529_v16 = vpop.f32.mrf.mxu0  ;;  %v3534_v17 = vpop.f32.mrf.mxu1 }
 0x1cb   :  { %v504_v23 = vmul.f32 %v3529_v16, %v4534_v49  ;;  %v603_v39 = vadd.f32 %v3534_v17, %v502_v33  ;;  %v607_v49 = vld [vmem:[%s5944_s3 + $0x8] sm:$0xff]  ;;  %v617_v16 = vld [vmem:[%s5944_s3 + $0x58] sm:$0xff] }
 0x1cc   :  { %v492_v19 = vpop.f32.mrf.mxu0  ;;  %v583_v21 = vpop.f32.mrf.mxu1 }
 0x1cd   :  { %v503_v27 = vmul.f32 %v492_v19, %v4503_v45  ;;  %v602_v47 = vadd.f32 %v583_v21, %v501_v37  ;;  %v610_v45 = vld [vmem:[%s5944_s3 + $0x20] sm:$0xff] }
 0x1ce   :  { %v3537_v25 = vpop.f32.mrf.mxu1 }
 0x1cf   :  { %v605_v29 = vadd.f32 %v3537_v25, %v504_v23 }
 0x1d0   :  { %v593_v31 = vpop.f32.mrf.mxu1 }
 0x1d1   :  { %v604_v35 = vadd.f32 %v593_v31, %v503_v27  ;;  %3538 = vmatprep.subr.mxu0 %v605_v29 }
 0x1d2   :  { %3539 = vmatpush3.msra.mxu0 %v605_v29 }
 0x1d3   :  { %3540 = vmatprep.subr.mxu0 %v604_v35 }
 0x1d4   :  { %3541 = vmatpush3.msra.mxu0 %v604_v35 }
 0x1d5   :  { %3542 = vmatprep.subr.mxu0 %v603_v39 }
 0x1d6   :  { %3543 = vmatpush3.msra.mxu0 %v603_v39 }
 0x1d7   :  { %3544 = vmatprep.subr.mxu0 %v602_v47 }
 0x1d8   :  { %3545 = vmatpush3.msra.mxu0 %v602_v47 }
 0x1d9   :  { %3547 = vmatmul.mubr.msk.f32.vlgmr.msra.gmra.mxu0 %vm5956_vm4, %v607_v49 }
 0x1da   :  { %3549 = vmatprep.mubr.msk.f32.mxu0 %vm5956_vm4, %v608_v44 }
 0x1dd   :  { %3550 = vmatmul.mubr.msk.f32.gmra.mxu0 %vm5956_vm4, %v609_v1 }
 0x1de   :  { %3552 = vmatprep.mubr.msk.f32.mxu0 %vm5956_vm4, %v610_v45 }
 0x1e1   :  { %3553 = vmatmul.mubr.msk.f32.gmra.mxu0 %vm5956_vm4, %v611_v48 }
 0x1e2   :  { %3555 = vmatprep.mubr.msk.f32.mxu0 %vm5956_vm4, %v612_v50 }
 0x1e5   :  { %3556 = vmatmul.mubr.msk.f32.gmra.mxu0 %vm5956_vm4, %v613_v51 }
 0x1e6   :  { %3558 = vmatprep.mubr.msk.f32.mxu0 %vm5956_vm4, %v614_v12 }
 0x1e9   :  { %3559 = vmatmul.mubr.msk.f32.gmra.mxu0 %vm5956_vm4, %v615_v13 }
 0x1ea   :  { %3561 = vmatprep.mubr.msk.f32.mxu0 %vm5956_vm4, %v616_v14 }
 0x1ed   :  { %3562 = vmatmul.mubr.msk.f32.gmra.mxu0 %vm5956_vm4, %v617_v16 }
 0x299   :  { %v3548_v54 = vpop.f32.mrf.mxu0 }
 0x29a   :  { %v799_v21 = vadd.f32 %v3548_v54, %v638_v10 }
 0x29b   :  { %v793_v56 = vpop.f32.mrf.mxu0 }
 0x29c   :  { %v794_v57 = vadd.f32 %v793_v56, %v633_v52 }
 0x29d   :  { %v4642_v58 = vpop.f32.mrf.mxu0 }
 0x29e   :  { %852 = vxpose.xlu1.b32.start.end [1/1] (short) %v794_v57, 128 }
 0x29f   :  { %v803_v60 = vpop.f32.mrf.mxu0 }
 0x2a0   :  { %v804_v61 = vadd.f32 %v803_v60, %v643_v59 }
 0x2a1   :  { %v3554_v63 = vpop.f32.mrf.mxu0 }
 0x2a2   :  { %v819_v3 = vadd.f32 %v3554_v63, %v658_v62  ;;  %1303 = vxpose.xlu0.b32.start.end [1/1] (short) %v804_v61, 128 }
 0x2a3   :  { %v813_v4 = vpop.f32.mrf.mxu0 }
 0x2a4   :  { %v814_v6 = vadd.f32 %v813_v4, %v653_v53  ;;  %3590 = vmatprep.subr.mxu0 %v819_v3 }
 0x2a5   :  { %v4644_v7 = vpop.f32.mrf.mxu0  ;;  %3591 = vmatpush3.msra.mxu0 %v819_v3 }
 0x2a6   :  { %3564 = vmatprep.subr.mxu1 %v814_v6 }
 0x2a7   :  { %v823_v8 = vpop.f32.mrf.mxu0  ;;  %3565 = vmatpush3.msra.mxu1 %v814_v6  ;;  %v3063_v6 = vsel %vm4511_vm10, 1.0, %v5953_v0 }
 0x2a8   :  { %v824_v9 = vadd.f32 %v823_v8, %v663_v55  ;;  %v3064_v8 = vsel %vm4485_vm7, 1.0, %v5953_v0 }
 0x2aa   :  { %3616 = vmatprep.subr.mxu1 %v824_v9 }
 0x2f8   :  { %647 = vperm.xlu1 %3856, %v621_v11  }
 0x307   :  { %667 = vperm.xlu0 %3855, %v625_v5  }
 0x31a   :  { %v868_v15 = vpop.trf.xlu1 }
 0x31b   :  { %3566 = vmatprep.mubr.msk.f32.mxu1 %vm884_vm11, %v868_v15 }
 0x31e   :  { %v869_v17 = vpop.trf.xlu1  ;;  %v1319_v19 = vpop.trf.xlu0 }
 0x31f   :  { %3567 = vmatmul.mubr.msk.f32.vlgmr.msra.gmra.mxu1 %vm884_vm11, %v869_v17 }
 0x320   :  { %3617 = vmatpush3.msra.mxu1 %v824_v9  ;;  %v3067_v9 = vsel %vm4429_vm2, 1.0, %v5953_v0 }
 0x321   :  { %1078 = vxpose.xlu1.b32.start.end [1/1] (short) %v799_v21, 128  ;;  %3668 = vmatprep.subr.msk.mxu1 %vm412_vm15, %v4588_v2 }
 0x322   :  { %v870_v23 = vpop.trf.xlu1  ;;  %v1320_v25 = vpop.trf.xlu0 }
 0x323   :  { %3569 = vmatprep.mubr.msk.f32.mxu1 %vm884_vm11, %v870_v23 }
 0x326   :  { %v871_v27 = vpop.trf.xlu1  ;;  %v1321_v29 = vpop.trf.xlu0 }
 0x327   :  { %3570 = vmatmul.mubr.msk.f32.gmra.mxu1 %vm884_vm11, %v871_v27 }
 0x32a   :  { %v872_v31 = vpop.trf.xlu1  ;;  %v1322_v33 = vpop.trf.xlu0 }
 0x32b   :  { %3572 = vmatprep.mubr.msk.f32.mxu1 %vm884_vm11, %v872_v31 }
 0x32e   :  { %v873_v35 = vpop.trf.xlu1  ;;  %v1323_v39 = vpop.trf.xlu0 }
 0x32f   :  { %3573 = vmatmul.mubr.msk.f32.gmra.mxu1 %vm884_vm11, %v873_v35 }
 0x332   :  { %v874_v37 = vpop.trf.xlu1  ;;  %v1324_v49 = vpop.trf.xlu0 }
 0x333   :  { %3575 = vmatprep.mubr.msk.f32.mxu1 %vm884_vm11, %v874_v37 }
 0x336   :  { %v875_v47 = vpop.trf.xlu1  ;;  %v1325_v45 = vpop.trf.xlu0 }
 0x337   :  { %3576 = vmatmul.mubr.msk.f32.gmra.mxu1 %vm884_vm11, %v875_v47 }
 0x33a   :  { %v876_v44 = vpop.trf.xlu1  ;;  %v1326_v50 = vpop.trf.xlu0 }
 0x33b   :  { %3578 = vmatprep.mubr.msk.f32.mxu1 %vm884_vm11, %v876_v44 }
 0x33e   :  { %v877_v1 = vpop.trf.xlu1  ;;  %v1327_v53 = vpop.trf.xlu0 }
 0x33f   :  { %3579 = vmatmul.mubr.msk.f32.gmra.mxu1 %vm884_vm11, %v877_v1 }
 0x342   :  { %v878_v48 = vpop.trf.xlu1  ;;  %v1328_v55 = vpop.trf.xlu0 }
 0x343   :  { %3581 = vmatprep.mubr.msk.f32.mxu1 %vm884_vm11, %v878_v48 }
 0x346   :  { %v879_v51 = vpop.trf.xlu1  ;;  %v1329_v59 = vpop.trf.xlu0 }
 0x347   :  { %3582 = vmatmul.mubr.msk.f32.gmra.mxu1 %vm884_vm11, %v879_v51 }
 0x34a   :  { %v880_v52 = vpop.trf.xlu1  ;;  %v1330_v60 = vpop.trf.xlu0 }
 0x34b   :  { %3584 = vmatprep.mubr.msk.f32.mxu1 %vm884_vm11, %v880_v52 }
 0x34e   :  { %v881_v54 = vpop.trf.xlu1  ;;  %v1331_v61 = vpop.trf.xlu0 }
 0x34f   :  { %3585 = vmatmul.mubr.msk.f32.gmra.mxu1 %vm884_vm11, %v881_v54 }
 0x352   :  { %v882_v56 = vpop.trf.xlu1  ;;  %v1332_v62 = vpop.trf.xlu0 }
 0x353   :  { %3587 = vmatprep.mubr.msk.f32.mxu1 %vm884_vm11, %v882_v56 }
 0x356   :  { %v883_v57 = vpop.trf.xlu1 }
 0x357   :  { %3588 = vmatmul.mubr.msk.f32.gmra.mxu1 %vm884_vm11, %v883_v57 }
 0x358   :  { %3618 = vmatprep.mubr.msk.f32.mxu1 %vm884_vm11, %v1319_v19 }
 0x35b   :  { %3619 = vmatmul.mubr.msk.f32.vlgmr.msra.gmra.mxu1 %vm884_vm11, %v1320_v25 }
 0x35c   :  { %3621 = vmatprep.mubr.msk.f32.mxu1 %vm884_vm11, %v1321_v29  ;;  %3669 = vmatpush3.msk.msra.mxu1 %vm412_vm15, %v4588_v2  ;;  %v1333_v2 = vpop.trf.xlu0 }
 0x35d   :  { %3729 = vmatprep.subr.mxu1 %v5953_v0 }
 0x35f   :  { %3622 = vmatmul.mubr.msk.f32.gmra.mxu1 %vm884_vm11, %v1322_v33 }
 0x360   :  { %3624 = vmatprep.mubr.msk.f32.mxu1 %vm884_vm11, %v1323_v39  ;;  %v1334_v4 = vpop.trf.xlu0 }
 0x363   :  { %3625 = vmatmul.mubr.msk.f32.gmra.mxu1 %vm884_vm11, %v1324_v49 }
 0x364   :  { %3627 = vmatprep.mubr.msk.f32.mxu1 %vm884_vm11, %v1325_v45 }
 0x367   :  { %3628 = vmatmul.mubr.msk.f32.gmra.mxu1 %vm884_vm11, %v1326_v50 }
 0x368   :  { %3630 = vmatprep.mubr.msk.f32.mxu1 %vm884_vm11, %v1327_v53 }
 0x36b   :  { %3631 = vmatmul.mubr.msk.f32.gmra.mxu1 %vm884_vm11, %v1328_v55 }
 0x36c   :  { %3633 = vmatprep.mubr.msk.f32.mxu1 %vm884_vm11, %v1329_v59 }
 0x36f   :  { %3634 = vmatmul.mubr.msk.f32.gmra.mxu1 %vm884_vm11, %v1330_v60 }
 0x370   :  { %3636 = vmatprep.mubr.msk.f32.mxu1 %vm884_vm11, %v1331_v61 }
 0x373   :  { %3637 = vmatmul.mubr.msk.f32.gmra.mxu1 %vm884_vm11, %v1332_v62  ;;  %v648_v63 = vpop.permute.xlu1 %647 }
 0x374   :  { %v809_v3 = vadd.f32 %v4642_v58, %v648_v63  ;;  %3639 = vmatprep.mubr.msk.f32.mxu1 %vm884_vm11, %v1333_v2  ;;  %v3065_v58 = vsel %vm4465_vm6, 1.0, %v5953_v0 }
 0x376   :  { %1528 = vxpose.xlu0.b32.start.end [1/1] (short) %v809_v3, 128 }
 0x377   :  { %3640 = vmatmul.mubr.msk.f32.gmra.mxu1 %vm884_vm11, %v1334_v4 }
 0x378   :  { %3670 = vmatprep.mubr.msk.f32.mxu1 %vm399_vm13, %v3063_v6 }
 0x37b   :  { %3671 = vmatmul.mubr.msk.f32.vlgmr.msra.gmra.mxu1 %vm399_vm13, %v3064_v8 }
 0x37c   :  { %3673 = vmatprep.mubr.msk.f32.mxu1 %vm399_vm13, %v3065_v58 }
 0x37f   :  { %3674 = vmatmul.mubr.msk.f32.gmra.mxu1 %vm399_vm13, %v3066_v46 }
 0x380   :  { %3676 = vmatprep.mubr.msk.f32.mxu1 %vm399_vm13, %v3067_v9 }
 0x382   :  { %v668_v11 = vpop.permute.xlu0 %667 }
 0x383   :  { %v829_v41 = vadd.f32 %v4644_v7, %v668_v11  ;;  %3677 = vmatmul.mubr.msk.f32.gmra.mxu1 %vm399_vm13, %v3068_v42  ;;  %v3073_v7 = vsel %vm4315_vm3, 1.0, %v5953_v0  ;;  %vm6037_vm3 = vnez %v6006_v20 }
 0x384   :  { %3679 = vmatprep.mubr.msk.f32.mxu1 %vm399_vm13, %v3069_v43  ;;  %v3077_v30 = vsel %vm6037_vm3, 1.0, %v5953_v0 }
 0x385   :  { %3642 = vmatprep.subr.mxu0 %v829_v41 }
 0x387   :  { %3680 = vmatmul.mubr.msk.f32.gmra.mxu1 %vm399_vm13, %v3070_v40 }
 0x388   :  { %3682 = vmatprep.mubr.msk.f32.mxu1 %vm399_vm13, %v3071_v38 }
 0x38b   :  { %3683 = vmatmul.mubr.msk.f32.gmra.mxu1 %vm399_vm13, %v3072_v36 }
 0x38c   :  { %3685 = vmatprep.mubr.msk.f32.mxu1 %vm399_vm13, %v3073_v7 }
 0x38f   :  { %3686 = vmatmul.mubr.msk.f32.gmra.mxu1 %vm399_vm13, %v3074_v32 }
 0x390   :  { %3688 = vmatprep.mubr.msk.f32.mxu1 %vm399_vm13, %v3075_v34 }
 0x393   :  { %3689 = vmatmul.mubr.msk.f32.gmra.mxu1 %vm399_vm13, %v3076_v28 }
 0x394   :  { %3691 = vmatprep.mubr.msk.f32.mxu1 %vm399_vm13, %v3077_v30 }
 0x397   :  { %3692 = vmatmul.mubr.msk.f32.gmra.mxu1 %vm399_vm13, %v3078_v24 }
 0x39d   :  { %v1094_v26 = vpop.trf.xlu1 }
 0x39e   :  { %3592 = vmatprep.mubr.msk.f32.mxu0 %vm884_vm11, %v1094_v26 }
 0x3a1   :  { %v1095_v5 = vpop.trf.xlu1 }
 0x3a2   :  { %3593 = vmatmul.mubr.msk.f32.vlgmr.msra.gmra.mxu0 %vm884_vm11, %v1095_v5 }
 0x3a3   :  { %3643 = vmatpush3.msra.mxu0 %v829_v41 }
 0x3a4   :  { %3694 = vmatprep.subr.mxu0 %v5953_v0 }
 0x3a5   :  { %v1096_v20 = vpop.trf.xlu1 }
 0x3a6   :  { %3595 = vmatprep.mubr.msk.f32.mxu0 %vm884_vm11, %v1096_v20 }
 0x3a9   :  { %v1097_v22 = vpop.trf.xlu1 }
 0x3aa   :  { %3596 = vmatmul.mubr.msk.f32.gmra.mxu0 %vm884_vm11, %v1097_v22 }
 0x3ad   :  { %v1098_v10 = vpop.trf.xlu1 }
 0x3ae   :  { %3598 = vmatprep.mubr.msk.f32.mxu0 %vm884_vm11, %v1098_v10 }
 0x3b1   :  { %v1099_v18 = vpop.trf.xlu1 }
 0x3b2   :  { %3599 = vmatmul.mubr.msk.f32.gmra.mxu0 %vm884_vm11, %v1099_v18 }
 0x3b5   :  { %v1100_v12 = vpop.trf.xlu1 }
 0x3b6   :  { %3601 = vmatprep.mubr.msk.f32.mxu0 %vm884_vm11, %v1100_v12 }
 0x3b9   :  { %v1101_v13 = vpop.trf.xlu1 }
 0x3ba   :  { %3602 = vmatmul.mubr.msk.f32.gmra.mxu0 %vm884_vm11, %v1101_v13 }
 0x3bd   :  { %v1102_v14 = vpop.trf.xlu1 }
 0x3be   :  { %3604 = vmatprep.mubr.msk.f32.mxu0 %vm884_vm11, %v1102_v14 }
 0x3c1   :  { %v1103_v15 = vpop.trf.xlu1 }
 0x3c2   :  { %3605 = vmatmul.mubr.msk.f32.gmra.mxu0 %vm884_vm11, %v1103_v15 }
 0x3c5   :  { %v1104_v16 = vpop.trf.xlu1 }
 0x3c6   :  { %3607 = vmatprep.mubr.msk.f32.mxu0 %vm884_vm11, %v1104_v16 }
 0x3c9   :  { %v1105_v17 = vpop.trf.xlu1 }
 0x3ca   :  { %3608 = vmatmul.mubr.msk.f32.gmra.mxu0 %vm884_vm11, %v1105_v17 }
 0x3cd   :  { %v1106_v19 = vpop.trf.xlu1 }
 0x3ce   :  { %3610 = vmatprep.mubr.msk.f32.mxu0 %vm884_vm11, %v1106_v19 }
 0x3d1   :  { %v1107_v21 = vpop.trf.xlu1 }
 0x3d2   :  { %3611 = vmatmul.mubr.msk.f32.gmra.mxu0 %vm884_vm11, %v1107_v21 }
 0x3d5   :  { %v1108_v23 = vpop.trf.xlu1 }
 0x3d6   :  { %3613 = vmatprep.mubr.msk.f32.mxu0 %vm884_vm11, %v1108_v23  ;;  %v4923_v23 = vpop.f32.mrf.mxu0 }
 0x3d7   :  { %6039 = vst [vmem:[#allocation5_spill] sm:$0xff] %v4923_v23 }
 0x3d9   :  { %v1109_v25 = vpop.trf.xlu1 }
 0x3da   :  { %3614 = vmatmul.mubr.msk.f32.gmra.mxu0 %vm884_vm11, %v1109_v25 }
 0x3df   :  { %v4788_v27 = vpop.f32.mrf.mxu1 }
 0x3e1   :  { %v4790_v29 = vpop.f32.mrf.mxu1 }
 0x3e7   :  { %v4792_v31 = vpop.f32.mrf.mxu1 }
 0x3e9   :  { %v4794_v33 = vpop.f32.mrf.mxu1 }
 0x3ef   :  { %v4796_v35 = vpop.f32.mrf.mxu1 }
 0x3f1   :  { %v4799_v39 = vpop.f32.mrf.mxu1 }
 0x3f2   :  { %v1544_v37 = vpop.trf.xlu0 }
 0x3f3   :  { %3644 = vmatprep.mubr.msk.f32.mxu0 %vm884_vm11, %v1544_v37 }
 0x3f6   :  { %v1545_v47 = vpop.trf.xlu0 }
 0x3f7   :  { %3645 = vmatmul.mubr.msk.f32.vlgmr.msra.gmra.mxu0 %vm884_vm11, %v1545_v47  ;;  %v4802_v49 = vpop.f32.mrf.mxu1 }
 0x3f9   :  { %v4805_v1 = vpop.f32.mrf.mxu1 }
 0x3fa   :  { %v1546_v44 = vpop.trf.xlu0 }
 0x3fb   :  { %3647 = vmatprep.mubr.msk.f32.mxu0 %vm884_vm11, %v1546_v44 }
 0x3fe   :  { %v1547_v45 = vpop.trf.xlu0 }
 0x3ff   :  { %3648 = vmatmul.mubr.msk.f32.gmra.mxu0 %vm884_vm11, %v1547_v45  ;;  %v4808_v48 = vpop.f32.mrf.mxu1 }
 0x401   :  { %v4811_v51 = vpop.f32.mrf.mxu1 }
 0x402   :  { %v1548_v50 = vpop.trf.xlu0 }
 0x403   :  { %3650 = vmatprep.mubr.msk.f32.mxu0 %vm884_vm11, %v1548_v50 }
 0x406   :  { %v1549_v52 = vpop.trf.xlu0 }
 0x407   :  { %3651 = vmatmul.mubr.msk.f32.gmra.mxu0 %vm884_vm11, %v1549_v52  ;;  %v4814_v53 = vpop.f32.mrf.mxu1 }
 0x409   :  { %v4817_v55 = vpop.f32.mrf.mxu1 }
 0x40a   :  { %v1550_v54 = vpop.trf.xlu0 }
 0x40b   :  { %3653 = vmatprep.mubr.msk.f32.mxu0 %vm884_vm11, %v1550_v54 }
 0x40e   :  { %v1551_v56 = vpop.trf.xlu0 }
 0x40f   :  { %3654 = vmatmul.mubr.msk.f32.gmra.mxu0 %vm884_vm11, %v1551_v56  ;;  %v4820_v57 = vpop.f32.mrf.mxu1 }
 0x411   :  { %v4822_v60 = vpop.f32.mrf.mxu1 }
 0x412   :  { %v1552_v59 = vpop.trf.xlu0 }
 0x413   :  { %3656 = vmatprep.mubr.msk.f32.mxu0 %vm884_vm11, %v1552_v59 }
 0x416   :  { %v1553_v61 = vpop.trf.xlu0 }
 0x417   :  { %v4825_v62 = vpop.f32.mrf.mxu1  ;;  %3657 = vmatmul.mubr.msk.f32.gmra.mxu0 %vm884_vm11, %v1553_v61 }
 0x419   :  { %v4828_v2 = vpop.f32.mrf.mxu1 }
 0x41a   :  { %v1554_v63 = vpop.trf.xlu0 }
 0x41b   :  { %v4830_v3 = vpop.f32.mrf.mxu1  ;;  %3659 = vmatprep.mubr.msk.f32.mxu0 %vm884_vm11, %v1554_v63 }
 0x41d   :  { %v4833_v4 = vpop.f32.mrf.mxu1 }
 0x41e   :  { %v1555_v6 = vpop.trf.xlu0 }
 0x41f   :  { %v4835_v8 = vpop.f32.mrf.mxu1  ;;  %3660 = vmatmul.mubr.msk.f32.gmra.mxu0 %vm884_vm11, %v1555_v6 }
 0x421   :  { %v4838_v58 = vpop.f32.mrf.mxu1 }
 0x422   :  { %v1556_v46 = vpop.trf.xlu0 }
 0x423   :  { %v4840_v9 = vpop.f32.mrf.mxu1  ;;  %3662 = vmatprep.mubr.msk.f32.mxu0 %vm884_vm11, %v1556_v46 }
 0x425   :  { %v4843_v42 = vpop.f32.mrf.mxu1 }
 0x426   :  { %v1557_v43 = vpop.trf.xlu0 }
 0x427   :  { %v4845_v11 = vpop.f32.mrf.mxu1  ;;  %3663 = vmatmul.mubr.msk.f32.gmra.mxu0 %vm884_vm11, %v1557_v43 }
 0x429   :  { %v4848_v41 = vpop.f32.mrf.mxu1 }
 0x42a   :  { %v1558_v40 = vpop.trf.xlu0 }
 0x42b   :  { %v4850_v38 = vpop.f32.mrf.mxu1  ;;  %3665 = vmatprep.mubr.msk.f32.mxu0 %vm884_vm11, %v1558_v40 }
 0x42d   :  { %v4853_v36 = vpop.f32.mrf.mxu1 }
 0x42e   :  { %v1559_v7 = vpop.trf.xlu0 }
 0x42f   :  { %v3635_v32 = vpop.f32.mrf.mxu1  ;;  %3666 = vmatmul.mubr.msk.f32.gmra.mxu0 %vm884_vm11, %v1559_v7 }
 0x431   :  { %v4856_v34 = vpop.f32.mrf.mxu1 }
 0x433   :  { %v4858_v28 = vpop.f32.mrf.mxu1 }
 0x435   :  { %v4860_v30 = vpop.f32.mrf.mxu1 }
 0x437   :  { %v4862_v24 = vpop.f32.mrf.mxu1 }
 0x439   :  { %v4864_v26 = vpop.f32.mrf.mxu1 }
 0x43b   :  { %v4866_v5 = vpop.f32.mrf.mxu1 }
 0x43c   :  { %vm1947_vm1 = vcmp.gt.f32.partialorder %v4866_v5, 0.0 }
 0x43d   :  { %v4869_v20 = vpop.f32.mrf.mxu1  ;;  %v4874_v22 = vsel %vm1947_vm1, %v4788_v27, -1e+30 }
 0x43e   :  { %vm1946_vm5 = vcmp.gt.f32.partialorder %v4869_v20, 0.0  ;;  %2060 = vmax.xlane.f32.xlu0 %v4874_v22 }
 0x43f   :  { %v4878_v10 = vpop.f32.mrf.mxu1  ;;  %v4883_v18 = vsel %vm1946_vm5, %v4790_v29, -1e+30  ;;  %v4934_v29 = vpop.f32.mrf.mxu0  ;;  %v5356_v5 = vsel %vm1946_vm5, %v4833_v4, -1e+30 }
 0x440   :  { %vm1949_vm14 = vcmp.gt.f32.partialorder %v4878_v10, 0.0  ;;  %6040 = vst [vmem:[#allocation6_spill] sm:$0xff] %v4934_v29 }
 0x441   :  { %v4887_v12 = vpop.f32.mrf.mxu1  ;;  %v4892_v13 = vsel %vm1949_vm14, %v4792_v31, -1e+30 }
 0x442   :  { %2058 = vmax.xlane.f32.xlu0 %v4883_v18  ;;  %vm1948_vm2 = vcmp.gt.f32.partialorder %v4887_v12, 0.0 }
 0x443   :  { %v4896_v14 = vpop.f32.mrf.mxu1  ;;  %v4901_v15 = vsel %vm1948_vm2, %v4794_v33, -1e+30 }
 0x444   :  { %vm1951_vm9 = vcmp.gt.f32.partialorder %v4896_v14, 0.0  ;;  %v5312_v14 = vsel %vm1949_vm14, %v4835_v8, -1e+30 }
 0x445   :  { %v4905_v16 = vpop.f32.mrf.mxu1  ;;  %v4910_v17 = vsel %vm1951_vm9, %v4796_v35, -1e+30  ;;  %v4945_v35 = vpop.f32.mrf.mxu0 }
 0x446   :  { %2064 = vmax.xlane.f32.xlu0 %v4892_v13  ;;  %vm1950_vm6 = vcmp.gt.f32.partialorder %v4905_v16, 0.0  ;;  %6042 = vst [vmem:[#allocation8_spill] sm:$0xff] %v4945_v35  ;;  %v5324_v16 = vsel %vm1948_vm2, %v4838_v58, -1e+30  ;;  %v5340_v58 = vsel %vm1947_vm1, %v4830_v3, -1e+30 }
 0x447   :  { %v4914_v19 = vpop.f32.mrf.mxu1  ;;  %v4919_v21 = vsel %vm1950_vm6, %v4799_v39, -1e+30  ;;  %v4956_v47 = vpop.f32.mrf.mxu0 }
 0x448   :  { %vm1953_vm7 = vcmp.gt.f32.partialorder %v4914_v19, 0.0  ;;  %6044 = vst [vmem:[#allocation10_spill] sm:$0xff] %v4956_v47 }
 0x449   :  { %v4925_v25 = vpop.f32.mrf.mxu1  ;;  %v4930_v27 = vsel %vm1953_vm7, %v4802_v49, -1e+30 }
 0x44a   :  { %2062 = vmax.xlane.f32.xlu0 %v4901_v15  ;;  %vm1952_vm10 = vcmp.gt.f32.partialorder %v4925_v25, 0.0  ;;  %v5300_v25 = vsel %vm1950_vm6, %v4843_v42, -1e+30 }
 0x44b   :  { %v4936_v31 = vpop.f32.mrf.mxu1  ;;  %v4941_v33 = vsel %vm1952_vm10, %v4805_v1, -1e+30 }
 0x44c   :  { %6041 = vst [vmem:[#allocation7_spill] sm:$0xff] %v4941_v33  ;;  %vm1955_vm15 = vcmp.gt.f32.partialorder %v4936_v31, 0.0 }
 0x44d   :  { %v4947_v37 = vpop.f32.mrf.mxu1  ;;  %v4952_v39 = vsel %vm1955_vm15, %v4808_v48, -1e+30 }
 0x44e   :  { %2068 = vmax.xlane.f32.xlu0 %v4910_v17  ;;  %6043 = vst [vmem:[#allocation9_spill] sm:$0xff] %v4952_v39  ;;  %vm1954_vm13 = vcmp.gt.f32.partialorder %v4947_v37, 0.0 }
 0x44f   :  { %v4958_v49 = vpop.f32.mrf.mxu1  ;;  %v4963_v44 = vsel %vm1954_vm13, %v4811_v51, -1e+30 }
 0x450   :  { %6045 = vst [vmem:[#allocation11_spill] sm:$0xff] %v4963_v44  ;;  %vm1957_vm11 = vcmp.gt.f32.partialorder %v4958_v49, 0.0 }
 0x451   :  { %v4975_v50 = vsel %vm1957_vm11, %v4814_v53, -1e+30  ;;  %v4982_v52 = vpop.f32.mrf.mxu1  ;;  %v4986_v54 = vsel %vm1957_vm11, %v3635_v32, -1e+30 }
 0x452   :  { %2066 = vmax.xlane.f32.xlu0 %v4919_v21  ;;  %6046 = vst [vmem:[#allocation12_spill] sm:$0xff] %v4975_v50  ;;  %6047 = vst [vmem:[#allocation13_spill] sm:$0xff] %v4986_v54  ;;  %vm1956_vm12 = vcmp.gt.f32.partialorder %v4982_v52, 0.0 }
 0x453   :  { %v4999_v61 = vsel %vm1956_vm12, %v4817_v55, -1e+30  ;;  %v5006_v6 = vpop.f32.mrf.mxu1  ;;  %v5011_v46 = vsel %vm1956_vm12, %v4856_v34, -1e+30 }
 0x454   :  { %6048 = vst [vmem:[#allocation14_spill] sm:$0xff] %v4999_v61  ;;  %6049 = vst [vmem:[#allocation15_spill] sm:$0xff] %v5011_v46  ;;  %vm1959_vm8 = vcmp.gt.f32.partialorder %v5006_v6, 0.0 }
 0x455   :  { %v5024_v7 = vsel %vm1959_vm8, %v4820_v57, -1e+30  ;;  %v5031_v34 = vpop.f32.mrf.mxu1 }
 0x456   :  { %2072 = vmax.xlane.f32.xlu0 %v4930_v27  ;;  %6050 = vst [vmem:[#allocation16_spill] sm:$0xff] %v5024_v7  ;;  %vm1958_vm3 = vcmp.gt.f32.partialorder %v5031_v34, 0.0  ;;  %v5276_v34 = vsel %vm1952_vm10, %v4848_v41, -1e+30 }
 0x457   :  { %v5068_v35 = vpop.f32.mrf.mxu1 }
 0x458   :  { %vm1961_vm0 = vcmp.gt.f32.partialorder %v5068_v35, 0.0 }
 0x459   :  { %v5076_v23 = vpop.f32.mrf.mxu1  ;;  %v5247_v6 = vsel %vm1961_vm0, %v4825_v62, -1e+30 }
 0x45a   :  { %2070 = vmax.xlane.f32.xlu0 %v4941_v33  ;;  %vm1960_vm4 = vcmp.gt.f32.partialorder %v5076_v23, 0.0 }
 0x45e   :  { %2076 = vmax.xlane.f32.xlu0 %v4952_v39 }
 0x462   :  { %2074 = vmax.xlane.f32.xlu0 %v4963_v44  ;;  %v3594_v1 = vpop.f32.mrf.mxu0 }
 0x463   :  { %v4969_v45 = vsel %vm1947_vm1, %v3594_v1, -1e+30  ;;  %v5036_v1 = vsel %vm1959_vm8, %v4858_v28, -1e+30 }
 0x464   :  { %2092 = vmax.xlane.f32.xlu1 %v4969_v45  ;;  %v1224_v48 = vpop.f32.mrf.mxu0  ;;  %6052 = vst [vmem:[#allocation18_spill] sm:$0xff] %v5036_v1 }
 0x465   :  { %v4979_v51 = vsel %vm1946_vm5, %v1224_v48, -1e+30 }
 0x466   :  { %2080 = vmax.xlane.f32.xlu0 %v4975_v50 }
 0x468   :  { %2090 = vmax.xlane.f32.xlu1 %v4979_v51 }
 0x46a   :  { %2144 = vmax.xlane.f32.xlu0 %v4986_v54  ;;  %v3597_v53 = vpop.f32.mrf.mxu0  ;;  %v5088_v54 = vsel %vm1960_vm4, %v4828_v2, -1e+30 }
 0x46b   :  { %v4993_v56 = vsel %vm1949_vm14, %v3597_v53, -1e+30  ;;  %v5049_v53 = vsel %vm1958_vm3, %v4822_v60, -1e+30  ;;  %6057 = vst [vmem:[#allocation23_spill] sm:$0xff] %v5088_v54 }
 0x46c   :  { %2096 = vmax.xlane.f32.xlu1 %v4993_v56  ;;  %v1234_v59 = vpop.f32.mrf.mxu0  ;;  %6053 = vst [vmem:[#allocation19_spill] sm:$0xff] %v5049_v53 }
 0x46d   :  { %v5003_v63 = vsel %vm1948_vm2, %v1234_v59, -1e+30  ;;  %v5055_v59 = vsel %vm1958_vm3, %v4860_v30, -1e+30 }
 0x46e   :  { %2078 = vmax.xlane.f32.xlu0 %v4999_v61  ;;  %6054 = vst [vmem:[#allocation20_spill] sm:$0xff] %v5055_v59 }
 0x470   :  { %2094 = vmax.xlane.f32.xlu1 %v5003_v63 }
 0x472   :  { %2142 = vmax.xlane.f32.xlu0 %v5011_v46  ;;  %v3600_v55 = vpop.f32.mrf.mxu0  ;;  %v5081_v46 = vsel %vm1961_vm0, %v4862_v24, -1e+30 }
 0x473   :  { %v5018_v43 = vsel %vm1951_vm9, %v3600_v55, -1e+30  ;;  %6056 = vst [vmem:[#allocation22_spill] sm:$0xff] %v5081_v46 }
 0x474   :  { %2100 = vmax.xlane.f32.xlu1 %v5018_v43  ;;  %v1244_v40 = vpop.f32.mrf.mxu0 }
 0x475   :  { %v5028_v32 = vsel %vm1950_vm6, %v1244_v40, -1e+30 }
 0x476   :  { %6051 = vst [vmem:[#allocation17_spill] sm:$0xff] %v5028_v32  ;;  %2084 = vmax.xlane.f32.xlu0 %v5024_v7 }
 0x478   :  { %2098 = vmax.xlane.f32.xlu1 %v5028_v32 }
 0x47a   :  { %2148 = vmax.xlane.f32.xlu0 %v5036_v1  ;;  %v3603_v57 = vpop.f32.mrf.mxu0 }
 0x47b   :  { %v5043_v48 = vsel %vm1953_vm7, %v3603_v57, -1e+30 }
 0x47c   :  { %2104 = vmax.xlane.f32.xlu1 %v5043_v48  ;;  %v1254_v28 = vpop.f32.mrf.mxu0 }
 0x47d   :  { %v6068_v20 = vld [vmem:[#allocation17_spill] sm:$0xff] }
 0x47e   :  { %2082 = vmax.xlane.f32.xlu0 %v5049_v53 }
 0x482   :  { %2146 = vmax.xlane.f32.xlu0 %v5055_v59  ;;  %v3606_v55 = vpop.f32.mrf.mxu0 }
 0x483   :  { %v5137_v19 = vsel %vm1955_vm15, %v3606_v55, -1e+30 }
 0x484   :  { %v5058_v40 = vpop.f32.mrf.mxu0 }
 0x48a   :  { %v5060_v57 = vpop.f32.mrf.mxu0 }
 0x48c   :  { %v5062_v0 = vpop.f32.mrf.mxu0 }
 0x48d   :  { %v5208_v37 = vsel %vm1956_vm12, %v5062_v0, -1e+30 }
 0x492   :  { %v5064_v47 = vpop.f32.mrf.mxu0 }
 0x494   :  { %v5066_v60 = vpop.f32.mrf.mxu0 }
 0x49a   :  { %v3615_v29 = vpop.f32.mrf.mxu0 }
 0x49b   :  { %v5073_v30 = vsel %vm1961_vm0, %v3615_v29, -1e+30  ;;  %v5094_v29 = vsel %vm1960_vm4, %v4864_v26, -1e+30 }
 0x49c   :  { %6055 = vst [vmem:[#allocation21_spill] sm:$0xff] %v5073_v30  ;;  %2120 = vmax.xlane.f32.xlu0 %v5073_v30  ;;  %6058 = vst [vmem:[#allocation24_spill] sm:$0xff] %v5094_v29  ;;  %v5097_v24 = vpop.f32.mrf.mxu0 }
 0x49d   :  { %v5263_v62 = vsel %vm1960_vm4, %v5097_v24, -1e+30 }
 0x4a0   :  { %2152 = vmax.xlane.f32.xlu0 %v5081_v46 }
 0x4a4   :  { %2086 = vmax.xlane.f32.xlu0 %v5088_v54 }
 0x4a8   :  { %2150 = vmax.xlane.f32.xlu0 %v5094_v29 }
 0x4b7   :  { %v5099_v59 = vpop.f32.mrf.mxu0 }
 0x4b8   :  { %v5332_v10 = vsel %vm1947_vm1, %v5099_v59, -1e+30  ;;  %vm6148_vm1 = vcmask 261120  }
 0x4b9   :  { %v5101_v1 = vpop.f32.mrf.mxu0 }
 0x4bf   :  { %v5103_v46 = vpop.f32.mrf.mxu0 }
 0x4c1   :  { %v5105_v30 = vpop.f32.mrf.mxu0 }
 0x4c2   :  { %v5318_v42 = vsel %vm1948_vm2, %v5105_v30, -1e+30  ;;  %vm6151_vm2 = vmmov %vm6148_vm1 }
 0x4c7   :  { %v2061_v2 = vpop.xlane.xlu0 %2060  ;;  %v5108_v53 = vpop.f32.mrf.mxu0 }
 0x4c8   :  { %v2187_v54 = vsub.f32 %v4874_v22, %v2061_v2  ;;  %v5282_v24 = vsel %vm1951_vm9, %v5108_v53, -1e+30  ;;  %v5348_v53 = vsel %vm1946_vm5, %v5101_v1, -1e+30  ;;  %vm6149_vm5 = vmmov %vm6148_vm1 }
 0x4c9   :  { %v5111_v61 = vpop.f32.mrf.mxu0 }
 0x4ca   :  { %v2252_v7 = vmul.f32 1.442695, %v2187_v54  ;;  %v5294_v41 = vsel %vm1950_vm6, %v5111_v61, -1e+30 }
 0x4cb   :  { %v2059_v26 = vpop.xlane.xlu0 %2058 }
 0x4cc   :  { %3865 = vpow2.f32 %v2252_v7  ;;  %v2186_v29 = vsub.f32 %v4883_v18, %v2059_v26  ;;  %v5123_v18 = vsel %vm1953_vm7, %v4845_v11, -1e+30 }
 0x4ce   :  { %v2250_v50 = vmul.f32 1.442695, %v2186_v29 }
 0x4cf   :  { %v2065_v44 = vpop.xlane.xlu0 %2064  ;;  %v3655_v39 = vpop.f32.mrf.mxu0 }
 0x4d0   :  { %3867 = vpow2.f32 %v2250_v50  ;;  %v2189_v33 = vsub.f32 %v4892_v13, %v2065_v44  ;;  %v5116_v32 = vsel %vm1953_vm7, %v3655_v39, -1e+30  ;;  %v5129_v44 = vsel %vm1952_vm10, %v1254_v28, -1e+30 }
 0x4d1   :  { %6059 = vst [vmem:[#allocation25_spill] sm:$0xff] %v5116_v32  ;;  %2168 = vmax.xlane.f32.xlu1 %v5116_v32  ;;  %v5142_v2 = vpop.f32.mrf.mxu0 }
 0x4d2   :  { %v2256_v22 = vmul.f32 1.442695, %v2189_v33  ;;  %v5270_v35 = vsel %vm1952_vm10, %v5142_v2, -1e+30  ;;  %v5288_v2 = vsel %vm1951_vm9, %v4840_v9, -1e+30 }
 0x4d3   :  { %v2063_v54 = vpop.xlane.xlu0 %2062  ;;  %v5306_v9 = vsel %vm1949_vm14, %v5103_v46, -1e+30  ;;  %vm6150_vm14 = vmmov %vm6148_vm1 }
 0x4d4   :  { %3869 = vpow2.f32 %v2256_v22  ;;  %v2188_v7 = vsub.f32 %v4901_v15, %v2063_v54 }
 0x4d5   :  { %2136 = vmax.xlane.f32.xlu1 %v5123_v18 }
 0x4d6   :  { %v2254_v50 = vmul.f32 1.442695, %v2188_v7  ;;  %v5166_v7 = vsel %vm1954_vm13, %v5058_v40, -1e+30  ;;  %v5185_v40 = vsel %vm1954_vm13, %v4853_v36, -1e+30 }
 0x4d7   :  { %v2069_v13 = vpop.xlane.xlu0 %2068  ;;  %v3658_v26 = vpop.f32.mrf.mxu0 }
 0x4d8   :  { %3871 = vpow2.f32 %v2254_v50  ;;  %v2191_v39 = vsub.f32 %v4910_v17, %v2069_v13  ;;  %v5148_v22 = vsel %vm1955_vm15, %v3658_v26, -1e+30 }
 0x4d9   :  { %v5131_v33 = vpop.eup %3865  ;;  %2102 = vmax.xlane.f32.xlu1 %v5129_v44  ;;  %v1714_v13 = vpop.f32.mrf.mxu0 }
 0x4da   :  { %6060 = vst [vmem:[#allocation26_spill] sm:$0xff] %v5131_v33  ;;  %v2260_v15 = vmul.f32 1.442695, %v2191_v39  ;;  %2380 = vadd.xlane.f32.xlu0 %v5131_v33  ;;  %v5223_v33 = vsel %vm1959_vm8, %v5064_v47, -1e+30 }
 0x4db   :  { %v2067_v11 = vpop.xlane.xlu0 %2066  ;;  %v5236_v47 = vsel %vm1958_vm3, %v5066_v60, -1e+30 }
 0x4dc   :  { %3873 = vpow2.f32 %v2260_v15  ;;  %v2190_v29 = vsub.f32 %v4919_v21, %v2067_v11  ;;  %v5157_v21 = vsel %vm1955_vm15, %v4850_v38, -1e+30  ;;  %v5174_v38 = vsel %vm1954_vm13, %v1714_v13, -1e+30 }
 0x4dd   :  { %v5140_v17 = vpop.eup %3867  ;;  %2108 = vmax.xlane.f32.xlu1 %v5137_v19  ;;  %v5193_v11 = vsel %vm1957_vm11, %v5060_v57, -1e+30 }
 0x4de   :  { %6061 = vst [vmem:[#allocation27_spill] sm:$0xff] %v5140_v17  ;;  %v2258_v28 = vmul.f32 1.442695, %v2190_v29  ;;  %2378 = vadd.xlane.f32.xlu0 %v5140_v17 }
 0x4e0   :  { %3875 = vpow2.f32 %v2258_v28  ;;  %v3661_v28 = vpop.f32.mrf.mxu0 }
 0x4e1   :  { %v5150_v55 = vpop.eup %3869  ;;  %2172 = vmax.xlane.f32.xlu1 %v5148_v22  ;;  %v5200_v26 = vsel %vm1957_vm11, %v3661_v28, -1e+30  ;;  %v2073_v28 = vpop.xlane.xlu0 %2072 }
 0x4e2   :  { %6062 = vst [vmem:[#allocation28_spill] sm:$0xff] %v5150_v55  ;;  %2384 = vadd.xlane.f32.xlu0 %v5150_v55  ;;  %v1724_v57 = vpop.f32.mrf.mxu0 }
 0x4e3   :  { %v5215_v17 = vsel %vm1956_vm12, %v1724_v57, -1e+30 }
 0x4e5   :  { %v5159_v54 = vpop.eup %3871  ;;  %2140 = vmax.xlane.f32.xlu1 %v5157_v21 }
 0x4e6   :  { %6063 = vst [vmem:[#allocation29_spill] sm:$0xff] %v5159_v54  ;;  %2382 = vadd.xlane.f32.xlu0 %v5159_v54  ;;  %v2193_v54 = vsub.f32 %v4930_v27, %v2073_v28 }
 0x4e7   :  { %v3664_v52 = vpop.f32.mrf.mxu0 }
 0x4e8   :  { %v5230_v57 = vsel %vm1959_vm8, %v3664_v52, -1e+30 }
 0x4e9   :  { %v5168_v50 = vpop.eup %3873  ;;  %2106 = vmax.xlane.f32.xlu1 %v5166_v7  ;;  %v1734_v32 = vpop.f32.mrf.mxu0 }
 0x4ea   :  { %6064 = vst [vmem:[#allocation30_spill] sm:$0xff] %v5168_v50  ;;  %2388 = vadd.xlane.f32.xlu0 %v5168_v50  ;;  %v2264_v50 = vmul.f32 1.442695, %v2193_v54  ;;  %v5241_v27 = vsel %vm1958_vm3, %v1734_v32, -1e+30 }
 0x4ed   :  { %v5176_v31 = vpop.eup %3875  ;;  %2170 = vmax.xlane.f32.xlu1 %v5174_v38  ;;  %v5179_v39 = vpop.xlane.xlu1 %2092 }
 0x4ee   :  { %6065 = vst [vmem:[#allocation31_spill] sm:$0xff] %v5176_v31  ;;  %2386 = vadd.xlane.f32.xlu0 %v5176_v31  ;;  %v2203_v8 = vsub.f32 %v4969_v45, %v5179_v39 }
 0x4ef   :  { %v3667_v60 = vpop.f32.mrf.mxu0 }
 0x4f0   :  { %v2284_v61 = vmul.f32 1.442695, %v2203_v8 }
 0x4f1   :  { %2138 = vmax.xlane.f32.xlu1 %v5185_v40  ;;  %v5188_v15 = vpop.xlane.xlu1 %2090  ;;  %v1744_v59 = vpop.f32.mrf.mxu0 }
 0x4f2   :  { %v2202_v46 = vsub.f32 %v4979_v51, %v5188_v15  ;;  %v5363_v54 = vsel %vm1960_vm4, %v1744_v59, -1e+30  ;;  %vm4150_vm4 = vmmov 0  }
 0x4f4   :  { %v2282_v12 = vmul.f32 1.442695, %v2202_v46 }
 0x4f5   :  { %2112 = vmax.xlane.f32.xlu1 %v5193_v11  ;;  %v5196_v29 = vpop.xlane.xlu1 %2096 }
 0x4f6   :  { %v2205_v45 = vsub.f32 %v4993_v56, %v5196_v29  ;;  %v2071_v56 = vpop.xlane.xlu0 %2070 }
 0x4f8   :  { %v2288_v51 = vmul.f32 1.442695, %v2205_v45 }
 0x4f9   :  { %2176 = vmax.xlane.f32.xlu1 %v5200_v26  ;;  %v5203_v36 = vpop.xlane.xlu1 %2094 }
 0x4fa   :  { %v2204_v3 = vsub.f32 %v5003_v63, %v5203_v36  ;;  %v2077_v39 = vpop.xlane.xlu0 %2076  ;;  %v6071_v36 = vld [vmem:[#allocation7_spill] sm:$0xff] }
 0x4fc   :  { %v2286_v30 = vmul.f32 1.442695, %v2204_v3 }
 0x4fd   :  { %2110 = vmax.xlane.f32.xlu1 %v5208_v37  ;;  %v5211_v13 = vpop.xlane.xlu1 %2100 }
 0x4fe   :  { %v2207_v1 = vsub.f32 %v5018_v43, %v5211_v13  ;;  %v2192_v13 = vsub.f32 %v6071_v36, %v2071_v56  ;;  %v2075_v28 = vpop.xlane.xlu0 %2074 }
 0x500   :  { %v2292_v4 = vmul.f32 1.442695, %v2207_v1  ;;  %v2262_v8 = vmul.f32 1.442695, %v2192_v13 }
 0x501   :  { %2174 = vmax.xlane.f32.xlu1 %v5215_v17  ;;  %v5218_v49 = vpop.xlane.xlu1 %2098 }
 0x505   :  { %2116 = vmax.xlane.f32.xlu1 %v5223_v33  ;;  %v2105_v0 = vpop.xlane.xlu1 %2104 }
 0x506   :  { %v2209_v55 = vsub.f32 %v5043_v48, %v2105_v0 }
 0x508   :  { %v2296_v31 = vmul.f32 1.442695, %v2209_v55  ;;  %v5254_v55 = vsel %vm1961_vm0, %v3667_v60, -1e+30 }
 0x509   :  { %2180 = vmax.xlane.f32.xlu1 %v5230_v57 }
 0x50a   :  { %3877 = vpow2.f32 %v2296_v31 }
 0x50b   :  { %3879 = vpow2.f32 %v2264_v50  ;;  %v2206_v50 = vsub.f32 %v6068_v20, %v5218_v49  ;;  %v6077_v20 = vld [vmem:[#allocation11_spill] sm:$0xff] }
 0x50c   :  { %3881 = vpow2.f32 %v2284_v61 }
 0x50d   :  { %2114 = vmax.xlane.f32.xlu1 %v5236_v47  ;;  %3883 = vpow2.f32 %v2282_v12  ;;  %v2290_v23 = vmul.f32 1.442695, %v2206_v50  ;;  %v2081_v12 = vpop.xlane.xlu0 %2080  ;;  %v2194_v50 = vsub.f32 %v6077_v20, %v2075_v28 }
 0x50e   :  { %3885 = vpow2.f32 %v2288_v51  ;;  %v6074_v51 = vld [vmem:[#allocation9_spill] sm:$0xff] }
 0x50f   :  { %3887 = vpow2.f32 %v2286_v30 }
 0x510   :  { %3889 = vpow2.f32 %v2292_v4 }
 0x511   :  { %2178 = vmax.xlane.f32.xlu1 %v5241_v27  ;;  %3891 = vpow2.f32 %v2290_v23  ;;  %v5395_v1 = vpop.xlane.xlu0 %2144 }
 0x515   :  { %2088 = vmax.xlane.f32.xlu1 %v5247_v6 }
 0x517   :  { %v5250_v48 = vpop.eup %3877 }
 0x518   :  { %6066 = vst [vmem:[#allocation32_spill] sm:$0xff] %v5250_v48  ;;  %2424 = vadd.xlane.f32.xlu0 %v5250_v48  ;;  %v5258_v32 = vpop.eup %3879 }
 0x519   :  { %2184 = vmax.xlane.f32.xlu1 %v5254_v55  ;;  %6067 = vst [vmem:[#allocation33_spill] sm:$0xff] %v5258_v32  ;;  %v5370_v31 = vpop.eup %3881 }
 0x51a   :  { %6069 = vst [vmem:[#allocation17_spill] sm:$0xff] %v5370_v31  ;;  %v5375_v43 = vpop.eup %3883 }
 0x51b   :  { %6070 = vst [vmem:[#allocation34_spill] sm:$0xff] %v5375_v43  ;;  %v5380_v0 = vpop.eup %3885 }
 0x51c   :  { %2392 = vadd.xlane.f32.xlu0 %v5258_v32  ;;  %6072 = vst [vmem:[#allocation7_spill] sm:$0xff] %v5380_v0  ;;  %v5384_v46 = vpop.eup %3887 }
 0x51d   :  { %2118 = vmax.xlane.f32.xlu1 %v5263_v62  ;;  %6073 = vst [vmem:[#allocation35_spill] sm:$0xff] %v5384_v46  ;;  %v5390_v59 = vpop.eup %3889 }
 0x51e   :  { %6075 = vst [vmem:[#allocation9_spill] sm:$0xff] %v5390_v59 }
 0x521   :  { %2166 = vmax.xlane.f32.xlu1 %v5270_v35 }
 0x525   :  { %2134 = vmax.xlane.f32.xlu1 %v5276_v34 }
 0x529   :  { %2164 = vmax.xlane.f32.xlu1 %v5282_v24 }
 0x52d   :  { %2132 = vmax.xlane.f32.xlu1 %v5288_v2 }
 0x531   :  { %2162 = vmax.xlane.f32.xlu1 %v5294_v41 }
 0x535   :  { %2130 = vmax.xlane.f32.xlu1 %v5300_v25 }
 0x539   :  { %2160 = vmax.xlane.f32.xlu1 %v5306_v9 }
 0x53d   :  { %2128 = vmax.xlane.f32.xlu1 %v5312_v14 }
 0x541   :  { %2158 = vmax.xlane.f32.xlu1 %v5318_v42 }
 0x545   :  { %2126 = vmax.xlane.f32.xlu1 %v5324_v16 }
 0x549   :  { %2156 = vmax.xlane.f32.xlu1 %v5332_v10 }
 0x54d   :  { %2124 = vmax.xlane.f32.xlu1 %v5340_v58 }
 0x551   :  { %2154 = vmax.xlane.f32.xlu1 %v5348_v53 }
 0x555   :  { %2122 = vmax.xlane.f32.xlu1 %v5356_v5 }
 0x559   :  { %2182 = vmax.xlane.f32.xlu1 %v5363_v54 }
 0x55a   :  { %v5366_v63 = vpop.xlane.xlu1 %2168 }
 0x55d   :  { %2412 = vadd.xlane.f32.xlu1 %v5370_v31 }
 0x55e   :  { %v5373_v15 = vpop.xlane.xlu1 %2136 }
 0x561   :  { %2410 = vadd.xlane.f32.xlu1 %v5375_v43 }
 0x562   :  { %v2103_v29 = vpop.xlane.xlu1 %2102 }
 0x563   :  { %v2208_v49 = vsub.f32 %v5129_v44, %v2103_v29  ;;  %v2195_v44 = vsub.f32 %v6074_v51, %v2077_v39  ;;  %v2079_v29 = vpop.xlane.xlu0 %2078 }
 0x565   :  { %v2294_v52 = vmul.f32 1.442695, %v2208_v49  ;;  %2416 = vadd.xlane.f32.xlu1 %v5380_v0  ;;  %v2268_v30 = vmul.f32 1.442695, %v2195_v44  ;;  %v2266_v49 = vmul.f32 1.442695, %v2194_v50 }
 0x566   :  { %v2109_v60 = vpop.xlane.xlu1 %2108 }
 0x567   :  { %3893 = vpow2.f32 %v2294_v52  ;;  %v2211_v61 = vsub.f32 %v5137_v19, %v2109_v60  ;;  %v5397_v19 = vpop.eup %3891  ;;  %v5412_v28 = vpop.xlane.xlu0 %2142 }
 0x568   :  { %3895 = vpow2.f32 %v2262_v8  ;;  %6076 = vst [vmem:[#allocation36_spill] sm:$0xff] %v5397_v19 }
 0x569   :  { %2414 = vadd.xlane.f32.xlu1 %v5384_v46  ;;  %v2300_v3 = vmul.f32 1.442695, %v2211_v61  ;;  %v6081_v61 = vld [vmem:[#allocation12_spill] sm:$0xff] }
 0x56a   :  { %v5387_v45 = vpop.xlane.xlu1 %2172  ;;  %v2197_v51 = vsub.f32 %v6081_v61, %v2081_v12  ;;  %v6086_v46 = vld [vmem:[#allocation16_spill] sm:$0xff] }
 0x56b   :  { %3897 = vpow2.f32 %v2300_v3 }
 0x56c   :  { %3899 = vpow2.f32 %v2268_v30  ;;  %v2085_v30 = vpop.xlane.xlu0 %2084  ;;  %v2272_v50 = vmul.f32 1.442695, %v2197_v51 }
 0x56d   :  { %2420 = vadd.xlane.f32.xlu1 %v5390_v59  ;;  %v6088_v59 = vld [vmem:[#allocation21_spill] sm:$0xff] }
 0x56e   :  { %v5393_v56 = vpop.xlane.xlu1 %2140 }
 0x570   :  { %v5428_v61 = vpop.xlane.xlu0 %2148 }
 0x571   :  { %2418 = vadd.xlane.f32.xlu1 %v5397_v19 }
 0x572   :  { %v2107_v4 = vpop.xlane.xlu1 %2106 }
 0x573   :  { %v2210_v39 = vsub.f32 %v5166_v7, %v2107_v4 }
 0x574   :  { %v5402_v23 = vpop.eup %3893 }
 0x575   :  { %6078 = vst [vmem:[#allocation11_spill] sm:$0xff] %v5402_v23  ;;  %v2298_v36 = vmul.f32 1.442695, %v2210_v39  ;;  %2422 = vadd.xlane.f32.xlu0 %v5402_v23  ;;  %v5407_v52 = vpop.eup %3895 }
 0x576   :  { %v5405_v13 = vpop.xlane.xlu1 %2170  ;;  %6079 = vst [vmem:[#allocation37_spill] sm:$0xff] %v5407_v52 }
 0x577   :  { %3901 = vpow2.f32 %v2298_v36 }
 0x578   :  { %3903 = vpow2.f32 %v2266_v49  ;;  %v5414_v7 = vpop.eup %3897  ;;  %v6084_v49 = vld [vmem:[#allocation14_spill] sm:$0xff] }
 0x579   :  { %2390 = vadd.xlane.f32.xlu0 %v5407_v52  ;;  %6080 = vst [vmem:[#allocation38_spill] sm:$0xff] %v5414_v7  ;;  %v5419_v3 = vpop.eup %3899  ;;  %v2196_v12 = vsub.f32 %v6084_v49, %v2079_v29 }
 0x57a   :  { %v5410_v60 = vpop.xlane.xlu1 %2138  ;;  %6082 = vst [vmem:[#allocation12_spill] sm:$0xff] %v5419_v3 }
 0x57b   :  { %v2270_v51 = vmul.f32 1.442695, %v2196_v12 }
 0x57d   :  { %2428 = vadd.xlane.f32.xlu0 %v5414_v7 }
 0x57e   :  { %v2113_v8 = vpop.xlane.xlu1 %2112 }
 0x57f   :  { %v2213_v44 = vsub.f32 %v5193_v11, %v2113_v8 }
 0x581   :  { %v2304_v4 = vmul.f32 1.442695, %v2213_v44  ;;  %2396 = vadd.xlane.f32.xlu0 %v5419_v3 }
 0x582   :  { %v5422_v20 = vpop.xlane.xlu1 %2176 }
 0x583   :  { %3905 = vpow2.f32 %v2304_v4  ;;  %v2083_v4 = vpop.xlane.xlu0 %2082 }
 0x584   :  { %v5424_v39 = vpop.eup %3901  ;;  %3907 = vpow2.f32 %v2272_v50  ;;  %v2199_v50 = vsub.f32 %v6086_v46, %v2085_v30 }
 0x585   :  { %6083 = vst [vmem:[#allocation39_spill] sm:$0xff] %v5424_v39  ;;  %2426 = vadd.xlane.f32.xlu0 %v5424_v39  ;;  %v5431_v8 = vpop.eup %3903 }
 0x586   :  { %v2111_v36 = vpop.xlane.xlu1 %2110  ;;  %6085 = vst [vmem:[#allocation14_spill] sm:$0xff] %v5431_v8 }
 0x587   :  { %v2212_v11 = vsub.f32 %v5208_v37, %v2111_v36  ;;  %v2276_v36 = vmul.f32 1.442695, %v2199_v50 }
 0x589   :  { %v2302_v44 = vmul.f32 1.442695, %v2212_v11  ;;  %2394 = vadd.xlane.f32.xlu0 %v5431_v8  ;;  %v5441_v11 = vpop.xlane.xlu0 %2146 }
 0x58a   :  { %v5434_v43 = vpop.xlane.xlu1 %2174 }
 0x58b   :  { %3909 = vpow2.f32 %v2302_v44  ;;  %v6087_v44 = vld [vmem:[#allocation19_spill] sm:$0xff] }
 0x58c   :  { %3911 = vpow2.f32 %v2270_v51  ;;  %v2198_v46 = vsub.f32 %v6087_v44, %v2083_v4 }
 0x58d   :  { %v2121_v30 = vpop.xlane.xlu0 %2120 }
 0x58e   :  { %v2117_v31 = vpop.xlane.xlu1 %2116 }
 0x58f   :  { %v2215_v29 = vsub.f32 %v5223_v33, %v2117_v31 }
 0x590   :  { %v5438_v49 = vpop.eup %3905 }
 0x591   :  { %v2308_v0 = vmul.f32 1.442695, %v2215_v29  ;;  %2432 = vadd.xlane.f32.xlu0 %v5438_v49  ;;  %v5443_v19 = vpop.eup %3907  ;;  %v2274_v29 = vmul.f32 1.442695, %v2198_v46  ;;  %v2153_v23 = vpop.xlane.xlu0 %2152 }
 0x592   :  { %v2181_v37 = vpop.xlane.xlu1 %2180 }
 0x593   :  { %3913 = vpow2.f32 %v2308_v0  ;;  %v2217_v0 = vsub.f32 %v6088_v59, %v2121_v30  ;;  %v2247_v44 = vsub.f32 %v5230_v57, %v2181_v37 }
 0x594   :  { %3915 = vpow2.f32 %v2276_v36 }
 0x595   :  { %2400 = vadd.xlane.f32.xlu0 %v5443_v19  ;;  %v2312_v4 = vmul.f32 1.442695, %v2217_v0  ;;  %v2087_v59 = vpop.xlane.xlu0 %2086 }
 0x596   :  { %v2115_v12 = vpop.xlane.xlu1 %2114 }
 0x597   :  { %v2214_v33 = vsub.f32 %v5236_v47, %v2115_v12 }
 0x598   :  { %v5448_v31 = vpop.eup %3909 }
 0x599   :  { %v2306_v51 = vmul.f32 1.442695, %v2214_v33  ;;  %2430 = vadd.xlane.f32.xlu0 %v5448_v31  ;;  %v5452_v52 = vpop.eup %3911 }
 0x59a   :  { %v2179_v50 = vpop.xlane.xlu1 %2178 }
 0x59b   :  { %3917 = vpow2.f32 %v2306_v51  ;;  %v2246_v48 = vsub.f32 %v5241_v27, %v2179_v50 }
 0x59c   :  { %3919 = vpow2.f32 %v2274_v29  ;;  %v6089_v29 = vld [vmem:[#allocation23_spill] sm:$0xff] }
 0x59d   :  { %2398 = vadd.xlane.f32.xlu0 %v5452_v52  ;;  %3921 = vpow2.f32 %v2312_v4  ;;  %v2200_v0 = vsub.f32 %v6089_v29, %v2087_v59  ;;  %v2244_v29 = vsub.f32 %v5215_v17, %v5434_v43 }
 0x59e   :  { %v2089_v36 = vpop.xlane.xlu1 %2088 }
 0x59f   :  { %v2201_v47 = vsub.f32 %v5247_v6, %v2089_v36  ;;  %v2372_v6 = vmul.f32 1.442695, %v2247_v44  ;;  %v2245_v44 = vsub.f32 %v5200_v26, %v5422_v20 }
 0x5a0   :  { %v5456_v12 = vpop.eup %3913 }
 0x5a1   :  { %2436 = vadd.xlane.f32.xlu0 %v5456_v12  ;;  %v2280_v46 = vmul.f32 1.442695, %v2201_v47  ;;  %v5461_v51 = vpop.eup %3915 }
 0x5a2   :  { %v2185_v33 = vpop.xlane.xlu1 %2184 }
 0x5a3   :  { %v2249_v30 = vsub.f32 %v5254_v55, %v2185_v33  ;;  %3923 = vpow2.f32 %v2280_v46  ;;  %v6090_v55 = vld [vmem:[#allocation22_spill] sm:$0xff]  ;;  %v2278_v33 = vmul.f32 1.442695, %v2200_v0  ;;  %v2370_v46 = vmul.f32 1.442695, %v2246_v48 }
 0x5a4   :  { %v2233_v47 = vsub.f32 %v6090_v55, %v2153_v23  ;;  %v2368_v23 = vmul.f32 1.442695, %v2245_v44 }
 0x5a5   :  { %v2376_v32 = vmul.f32 1.442695, %v2249_v30  ;;  %2404 = vadd.xlane.f32.xlu0 %v5461_v51 }
 0x5a6   :  { %v2119_v36 = vpop.xlane.xlu1 %2118  ;;  %v2344_v50 = vmul.f32 1.442695, %v2233_v47 }
 0x5a7   :  { %3925 = vpow2.f32 %v2376_v32  ;;  %v2216_v57 = vsub.f32 %v5263_v62, %v2119_v36  ;;  %v6091_v32 = vld [vmem:[#allocation18_spill] sm:$0xff]  ;;  %v2366_v36 = vmul.f32 1.442695, %v2244_v29 }
 0x5a8   :  { %v5467_v37 = vpop.eup %3917  ;;  %3927 = vpow2.f32 %v2372_v6  ;;  %v2231_v62 = vsub.f32 %v6091_v32, %v5428_v61  ;;  %v6092_v61 = vld [vmem:[#allocation20_spill] sm:$0xff] }
 0x5a9   :  { %v2310_v4 = vmul.f32 1.442695, %v2216_v57  ;;  %2434 = vadd.xlane.f32.xlu0 %v5467_v37  ;;  %v5475_v27 = vpop.eup %3919  ;;  %v2230_v6 = vsub.f32 %v6092_v61, %v5441_v11  ;;  %v2151_v11 = vpop.xlane.xlu0 %2150 }
 0x5aa   :  { %v5471_v30 = vpop.xlane.xlu1 %2166  ;;  %v5484_v0 = vpop.eup %3921  ;;  %v2340_v26 = vmul.f32 1.442695, %v2231_v62  ;;  %v6096_v62 = vld [vmem:[#allocation24_spill] sm:$0xff] }
 0x5ab   :  { %3929 = vpow2.f32 %v2310_v4  ;;  %v6095_v4 = vld [vmem:[#allocation13_spill] sm:$0xff]  ;;  %v2338_v47 = vmul.f32 1.442695, %v2230_v6 }
 0x5ac   :  { %3931 = vpow2.f32 %v2278_v33  ;;  %v2229_v55 = vsub.f32 %v6095_v4, %v5395_v1 }
 0x5ad   :  { %2402 = vadd.xlane.f32.xlu0 %v5475_v27  ;;  %3933 = vpow2.f32 %v2370_v46 }
 0x5ae   :  { %v5480_v59 = vpop.xlane.xlu1 %2134  ;;  %3935 = vpow2.f32 %v2344_v50  ;;  %v2336_v32 = vmul.f32 1.442695, %v2229_v55  ;;  %v2232_v50 = vsub.f32 %v6096_v62, %v2151_v11 }
 0x5af   :  { %3937 = vpow2.f32 %v2368_v23 }
 0x5b0   :  { %v5489_v20 = vpop.eup %3923  ;;  %3939 = vpow2.f32 %v2340_v26  ;;  %v2342_v26 = vmul.f32 1.442695, %v2232_v50 }
 0x5b1   :  { %2440 = vadd.xlane.f32.xlu0 %v5484_v0  ;;  %3941 = vpow2.f32 %v2366_v36 }
 0x5b2   :  { %v5487_v48 = vpop.xlane.xlu1 %2164  ;;  %3943 = vpow2.f32 %v2338_v47 }
 0x5b3   :  { %3945 = vpow2.f32 %v2336_v32 }
 0x5b4   :  { %v5493_v57 = vpop.eup %3925  ;;  %3947 = vpow2.f32 %v2342_v26  ;;  %v5547_v26 = vpop.xlane.xlu0 %2380 }
 0x5b5   :  { %6093 = vst [vmem:[#allocation16_spill] sm:$0xff] %v5493_v57  ;;  %2408 = vadd.xlane.f32.xlu0 %v5489_v20  ;;  %2504 = vadd.xlane.f32.xlu1 %v5493_v57  ;;  %v5499_v43 = vpop.eup %3927  ;;  %6105 = vst [vmem:[#allocation41_spill] sm:$0xff] %v5547_v26  ;;  %v627_v26 = vld [vmem:[%s5945_s4 + $0x48] sm:$0xff] }
 0x5b6   :  { %v5497_v17 = vpop.xlane.xlu1 %2132  ;;  %6094 = vst [vmem:[#allocation19_spill] sm:$0xff] %v5499_v43 }
 0x5b8   :  { %v5503_v33 = vpop.eup %3929 }
 0x5b9   :  { %2500 = vadd.xlane.f32.xlu1 %v5499_v43  ;;  %2438 = vadd.xlane.f32.xlu0 %v5503_v33  ;;  %v5509_v46 = vpop.eup %3931 }
 0x5ba   :  { %v5507_v44 = vpop.xlane.xlu1 %2162  ;;  %v5512_v23 = vpop.eup %3933 }
 0x5bb   :  { %6097 = vst [vmem:[#allocation21_spill] sm:$0xff] %v5512_v23  ;;  %v5518_v29 = vpop.eup %3935 }
 0x5bc   :  { %6098 = vst [vmem:[#allocation23_spill] sm:$0xff] %v5518_v29  ;;  %v5520_v61 = vpop.eup %3937 }
 0x5bd   :  { %2498 = vadd.xlane.f32.xlu1 %v5512_v23  ;;  %2406 = vadd.xlane.f32.xlu0 %v5509_v46  ;;  %6099 = vst [vmem:[#allocation22_spill] sm:$0xff] %v5520_v61  ;;  %v5526_v36 = vpop.eup %3939  ;;  %v5553_v23 = vpop.xlane.xlu0 %2378 }
 0x5be   :  { %v5516_v1 = vpop.xlane.xlu1 %2130  ;;  %6100 = vst [vmem:[#allocation18_spill] sm:$0xff] %v5526_v36  ;;  %v5528_v4 = vpop.eup %3941  ;;  %6106 = vst [vmem:[#allocation42_spill] sm:$0xff] %v5553_v23 }
 0x5bf   :  { %6101 = vst [vmem:[#allocation20_spill] sm:$0xff] %v5528_v4  ;;  %v5534_v47 = vpop.eup %3943 }
 0x5c0   :  { %6102 = vst [vmem:[#allocation13_spill] sm:$0xff] %v5534_v47  ;;  %v5539_v32 = vpop.eup %3945 }
 0x5c1   :  { %2496 = vadd.xlane.f32.xlu1 %v5520_v61  ;;  %2472 = vadd.xlane.f32.xlu0 %v5518_v29  ;;  %6103 = vst [vmem:[#allocation24_spill] sm:$0xff] %v5539_v32  ;;  %v5544_v50 = vpop.eup %3947  ;;  %v6108_v29 = vld [vmem:[#allocation15_spill] sm:$0xff] }
 0x5c2   :  { %v5524_v6 = vpop.xlane.xlu1 %2160  ;;  %6104 = vst [vmem:[#allocation40_spill] sm:$0xff] %v5544_v50  ;;  %v2228_v57 = vsub.f32 %v6108_v29, %v5412_v28  ;;  %v2242_v29 = vsub.f32 %v5174_v38, %v5405_v13 }
 0x5c4   :  { %v2334_v23 = vmul.f32 1.442695, %v2228_v57  ;;  %v2362_v57 = vmul.f32 1.442695, %v2242_v29 }
 0x5c5   :  { %2494 = vadd.xlane.f32.xlu1 %v5528_v4  ;;  %2468 = vadd.xlane.f32.xlu0 %v5526_v36  ;;  %v5557_v36 = vpop.xlane.xlu0 %2384 }
 0x5c6   :  { %v5532_v55 = vpop.xlane.xlu1 %2128  ;;  %6107 = vst [vmem:[#allocation43_spill] sm:$0xff] %v5557_v36  ;;  %v2243_v36 = vsub.f32 %v5148_v22, %v5387_v45  ;;  %v2225_v45 = vsub.f32 %v5123_v18, %v5373_v15  ;;  %v626_v18 = vld [vmem:[%s5945_s4 + $0x40] sm:$0xff] }
 0x5c9   :  { %2466 = vadd.xlane.f32.xlu0 %v5534_v47  ;;  %v5564_v8 = vpop.xlane.xlu0 %2382 }
 0x5ca   :  { %v5537_v11 = vpop.xlane.xlu1 %2158 }
 0x5cd   :  { %2464 = vadd.xlane.f32.xlu0 %v5539_v32  ;;  %v5569_v3 = vpop.xlane.xlu0 %2388 }
 0x5ce   :  { %v5542_v62 = vpop.xlane.xlu1 %2126 }
 0x5d1   :  { %2470 = vadd.xlane.f32.xlu0 %v5544_v50  ;;  %v5573_v7 = vpop.xlane.xlu0 %2386 }
 0x5d2   :  { %v5549_v4 = vpop.xlane.xlu1 %2156 }
 0x5d6   :  { %v5551_v61 = vpop.xlane.xlu1 %2124 }
 0x5da   :  { %v5555_v47 = vpop.xlane.xlu1 %2154 }
 0x5de   :  { %v5559_v43 = vpop.xlane.xlu1 %2122 }
 0x5e2   :  { %v2183_v32 = vpop.xlane.xlu1 %2182 }
 0x5e3   :  { %v2248_v50 = vsub.f32 %v5363_v54, %v2183_v32  ;;  %v2364_v54 = vmul.f32 1.442695, %v2243_v36  ;;  %v5579_v32 = vpop.xlane.xlu0 %2424  ;;  %v2328_v36 = vmul.f32 1.442695, %v2225_v45  ;;  %v2220_v45 = vsub.f32 %v5324_v16, %v5542_v62 }
 0x5e4   :  { %v2227_v16 = vsub.f32 %v5157_v21, %v5393_v56  ;;  %v2240_v56 = vsub.f32 %v5270_v35, %v5471_v30  ;;  %v2238_v30 = vsub.f32 %v5294_v41, %v5507_v44  ;;  %v2236_v44 = vsub.f32 %v5318_v42, %v5537_v11 }
 0x5e5   :  { %v2374_v39 = vmul.f32 1.442695, %v2248_v50  ;;  %v2224_v50 = vsub.f32 %v5276_v34, %v5480_v59  ;;  %v2222_v34 = vsub.f32 %v5300_v25, %v5516_v1  ;;  %v2234_v42 = vsub.f32 %v5348_v53, %v5555_v47  ;;  %v628_v53 = vld [vmem:[%s5945_s4 + $0x50] sm:$0xff] }
 0x5e7   :  { %3949 = vpow2.f32 %v2374_v39  ;;  %677 = vperm.xlu0 %3855, %v627_v26   ;;  %v5587_v22 = vpop.xlane.xlu0 %2392 }
 0x5e8   :  { %3951 = vpow2.f32 %v2334_v23  ;;  %v2226_v23 = vsub.f32 %v5185_v40, %v5410_v60  ;;  %v2326_v40 = vmul.f32 1.442695, %v2224_v50  ;;  %v2223_v60 = vsub.f32 %v5288_v2, %v5497_v17 }
 0x5e9   :  { %3953 = vpow2.f32 %v2364_v54  ;;  %v2322_v2 = vmul.f32 1.442695, %v2222_v34  ;;  %v2221_v17 = vsub.f32 %v5312_v14, %v5532_v55  ;;  %v2318_v14 = vmul.f32 1.442695, %v2220_v45 }
 0x5ea   :  { %3955 = vpow2.f32 %v2362_v57  ;;  %v2330_v38 = vmul.f32 1.442695, %v2226_v23  ;;  %v2324_v15 = vmul.f32 1.442695, %v2223_v60  ;;  %v6109_v23 = vmov 0.0  }
 0x5eb   :  { %3761 = vmatprep.mubr.msk.f32.mxu1 %vm4150_vm4, %v6109_v23  ;;  %3726 = vmatprep.mubr.msk.f32.mxu0 %vm4150_vm4, %v6109_v23  ;;  %v2320_v1 = vmul.f32 1.442695, %v2221_v17  ;;  %v2219_v55 = vsub.f32 %v5340_v58, %v5551_v61  ;;  %v2218_v60 = vsub.f32 %v5356_v5, %v5559_v43  ;;  %v2332_v58 = vmul.f32 1.442695, %v2227_v16  ;;  %v6110_v61 = vld [vmem:[#allocation25_spill] sm:$0xff] }
 0x5ec   :  { %3957 = vpow2.f32 %v2330_v38  ;;  %v2241_v34 = vsub.f32 %v6110_v61, %v5366_v63  ;;  %v2358_v63 = vmul.f32 1.442695, %v2240_v56  ;;  %v2239_v45 = vsub.f32 %v5282_v24, %v5487_v48 }
 0x5ed   :  { %3959 = vpow2.f32 %v2328_v36  ;;  %v2316_v62 = vmul.f32 1.442695, %v2219_v55  ;;  %v2354_v24 = vmul.f32 1.442695, %v2238_v30  ;;  %v2237_v48 = vsub.f32 %v5306_v9, %v5524_v6 }
 0x5ee   :  { %3961 = vpow2.f32 %v2326_v40  ;;  %v2360_v5 = vmul.f32 1.442695, %v2241_v34  ;;  %v2356_v35 = vmul.f32 1.442695, %v2239_v45  ;;  %v2235_v9 = vsub.f32 %v5332_v10, %v5549_v4  ;;  %v5698_v4 = vpop.xlane.xlu1 %2412 }
 0x5ef   :  { %3963 = vpow2.f32 %v2324_v15  ;;  %v2352_v41 = vmul.f32 1.442695, %v2237_v48 }
 0x5f0   :  { %3965 = vpow2.f32 %v2322_v2  ;;  %v2314_v2 = vmul.f32 1.442695, %v2218_v60 }
 0x5f1   :  { %3967 = vpow2.f32 %v2320_v1 }
 0x5f2   :  { %3969 = vpow2.f32 %v2318_v14 }
 0x5f3   :  { %3971 = vpow2.f32 %v2316_v62 }
 0x5f4   :  { %v5575_v28 = vpop.eup %3949  ;;  %3973 = vpow2.f32 %v2332_v58 }
 0x5f5   :  { %2502 = vadd.xlane.f32.xlu1 %v5575_v28  ;;  %v5582_v39 = vpop.eup %3951  ;;  %3975 = vpow2.f32 %v2314_v2 }
 0x5f6   :  { %v5599_v54 = vpop.eup %3953  ;;  %3977 = vpow2.f32 %v2360_v5  ;;  %v2350_v5 = vmul.f32 1.442695, %v2236_v44  ;;  %v5711_v44 = vpop.xlane.xlu1 %2410 }
 0x5f7   :  { %v5609_v59 = vpop.eup %3955  ;;  %3979 = vpow2.f32 %v2358_v63  ;;  %v2348_v63 = vmul.f32 1.442695, %v2235_v9 }
 0x5f8   :  { %3981 = vpow2.f32 %v2356_v35  ;;  %v2346_v35 = vmul.f32 1.442695, %v2234_v42 }
 0x5f9   :  { %2462 = vadd.xlane.f32.xlu1 %v5582_v39  ;;  %v5620_v25 = vpop.eup %3957  ;;  %3983 = vpow2.f32 %v2354_v24 }
 0x5fa   :  { %v5627_v36 = vpop.eup %3959  ;;  %3985 = vpow2.f32 %v2352_v41  ;;  %v2920_v41 = vld [vmem:[%s5947_s6 + $0x10] sm:$0xff] }
 0x5fb   :  { %v5632_v50 = vpop.eup %3961  ;;  %3987 = vpow2.f32 %v2350_v5 }
 0x5fe   :  { %v5591_v13 = vpop.xlane.xlu0 %2422 }
 0x602   :  { %v5595_v26 = vpop.xlane.xlu0 %2390 }
 0x606   :  { %v5601_v29 = vpop.xlane.xlu0 %2428  ;;  %2492 = vadd.xlane.f32.xlu0 %v5599_v54 }
 0x60a   :  { %v5611_v57 = vpop.xlane.xlu0 %2396  ;;  %2490 = vadd.xlane.f32.xlu0 %v5609_v59  ;;  %672 = vperm.xlu1 %3856, %v626_v18   ;;  %v5641_v18 = vpop.eup %3963 }
 0x60b   :  { %v5648_v17 = vpop.eup %3965 }
 0x60c   :  { %v5655_v43 = vpop.eup %3967 }
 0x60d   :  { %v5662_v14 = vpop.eup %3969 }
 0x60e   :  { %2458 = vadd.xlane.f32.xlu0 %v5620_v25  ;;  %v5625_v38 = vpop.xlane.xlu0 %2426  ;;  %v5669_v16 = vpop.eup %3971 }
 0x60f   :  { %v5672_v60 = vpop.eup %3973 }
 0x610   :  { %v5676_v58 = vpop.eup %3975 }
 0x611   :  { %v5682_v34 = vpop.eup %3977 }
 0x612   :  { %2456 = vadd.xlane.f32.xlu0 %v5627_v36  ;;  %v5634_v40 = vpop.xlane.xlu0 %2394  ;;  %v5687_v6 = vpop.eup %3979 }
 0x613   :  { %v5692_v11 = vpop.eup %3981 }
 0x614   :  { %v5695_v30 = vpop.eup %3983 }
 0x615   :  { %v5700_v24 = vpop.eup %3985 }
 0x616   :  { %2454 = vadd.xlane.f32.xlu0 %v5632_v50  ;;  %v5706_v48 = vpop.eup %3987 }
 0x61a   :  { %v5643_v15 = vpop.xlane.xlu0 %2432  ;;  %2452 = vadd.xlane.f32.xlu0 %v5641_v18 }
 0x61e   :  { %v5650_v21 = vpop.xlane.xlu0 %2400  ;;  %2450 = vadd.xlane.f32.xlu0 %v5648_v17 }
 0x622   :  { %v5657_v1 = vpop.xlane.xlu0 %2430  ;;  %2448 = vadd.xlane.f32.xlu0 %v5655_v43 }
 0x626   :  { %v5664_v55 = vpop.xlane.xlu0 %2398  ;;  %2446 = vadd.xlane.f32.xlu0 %v5662_v14 }
 0x62a   :  { %v2437_v62 = vpop.xlane.xlu0 %2436  ;;  %2444 = vadd.xlane.f32.xlu0 %v5669_v16 }
 0x62e   :  { %v2405_v61 = vpop.xlane.xlu0 %2404  ;;  %2442 = vadd.xlane.f32.xlu0 %v5676_v58  ;;  %2460 = vadd.xlane.f32.xlu1 %v5672_v60 }
 0x632   :  { %v2435_v2 = vpop.xlane.xlu0 %2434  ;;  %2488 = vadd.xlane.f32.xlu1 %v5682_v34 }
 0x636   :  { %v2403_v56 = vpop.xlane.xlu0 %2402  ;;  %2486 = vadd.xlane.f32.xlu1 %v5687_v6 }
 0x63a   :  { %v2441_v45 = vpop.xlane.xlu0 %2440  ;;  %2484 = vadd.xlane.f32.xlu1 %v5692_v11 }
 0x63b   :  { %3989 = vrcp.f32 %v2441_v45  ;;  %v5718_v45 = vpop.xlane.xlu1 %2416 }
 0x63c   :  { %3991 = vpow2.f32 %v2348_v63 }
 0x63e   :  { %v2409_v10 = vpop.xlane.xlu0 %2408  ;;  %2482 = vadd.xlane.f32.xlu1 %v5695_v30 }
 0x63f   :  { %3993 = vrcp.f32 %v2409_v10  ;;  %v5730_v10 = vpop.xlane.xlu1 %2414 }
 0x640   :  { %3995 = vpow2.f32 %v2346_v35 }
 0x642   :  { %v2439_v47 = vpop.xlane.xlu0 %2438  ;;  %2480 = vadd.xlane.f32.xlu1 %v5700_v24 }
 0x643   :  { %3997 = vrcp.f32 %v2439_v47 }
 0x644   :  { %682 = vperm.xlu0 %3855, %v628_v53   ;;  %3999 = vrcp.f32 %v2437_v62 }
 0x646   :  { %v2407_v5 = vpop.xlane.xlu0 %2406  ;;  %2478 = vadd.xlane.f32.xlu1 %v5706_v48 }
 0x647   :  { %4001 = vrcp.f32 %v2407_v5 }
 0x648   :  { %v3990_v9 = vpop.eup %3989  ;;  %4003 = vrcp.f32 %v2405_v61  ;;  %2934 = vperm.xlu0 %3855, %v2920_v41  }
 0x649   :  { %v5714_v63 = vpop.eup %3991  ;;  %4005 = vrcp.f32 %v2435_v2  ;;  %v2601_v42 = vmul.f32 %v3990_v9, %v5484_v0 }
 0x64a   :  { %2476 = vadd.xlane.f32.xlu1 %v5714_v63  ;;  %4007 = vrcp.f32 %v5643_v15 }
 0x64b   :  { %3730 = vmatpush3.xpose.msra.mxu1 %v2601_v42  ;;  %4009 = vrcp.f32 %v2403_v56  ;;  %v2919_v42 = vld [vmem:[%s5947_s6 + $0x8] sm:$0xff] }
 0x64c   :  { %v3994_v62 = vpop.eup %3993  ;;  %3731 = vmatprep.subr.mxu1 %v6109_v23  ;;  %4011 = vrcp.f32 %v5650_v21 }
 0x64d   :  { %v5722_v35 = vpop.eup %3995  ;;  %v2585_v61 = vmul.f32 %v3994_v62, %v5489_v20  ;;  %4013 = vrcp.f32 %v5657_v1 }
 0x64e   :  { %2474 = vadd.xlane.f32.xlu1 %v5722_v35  ;;  %4015 = vrcp.f32 %v5601_v29 }
 0x64f   :  { %3695 = vmatpush3.xpose.msra.mxu0 %v2585_v61  ;;  %4017 = vrcp.f32 %v5664_v55 }
 0x650   :  { %v3998_v2 = vpop.eup %3997  ;;  %3696 = vmatprep.subr.mxu0 %v6109_v23  ;;  %4019 = vrcp.f32 %v5611_v57 }
 0x651   :  { %v2600_v0 = vmul.f32 %v3998_v2, %v5503_v33  ;;  %v4000_v15 = vpop.eup %3999  ;;  %v2421_v33 = vpop.xlane.xlu1 %2420  ;;  %4021 = vrcp.f32 %v5625_v38 }
 0x652   :  { %v2599_v56 = vmul.f32 %v4000_v15, %v5456_v12  ;;  %4023 = vrcp.f32 %v5579_v32 }
 0x653   :  { %3732 = vmatpush3.xpose.msra.mxu1 %v2600_v0  ;;  %4025 = vrcp.f32 %v5634_v40  ;;  %v2918_v40 = vld [vmem:[%s5947_s6] sm:$0xff]  ;;  %v6113_v0 = vld [vmem:[#allocation39_spill] sm:$0xff] }
 0x654   :  { %v4002_v53 = vpop.eup %4001  ;;  %3733 = vmatprep.subr.mxu1 %v6109_v23  ;;  %4027 = vrcp.f32 %v5587_v22 }
 0x655   :  { %v4004_v20 = vpop.eup %4003  ;;  %v2584_v21 = vmul.f32 %v4002_v53, %v5509_v46  ;;  %v2419_v41 = vpop.xlane.xlu1 %2418  ;;  %4029 = vrcp.f32 %v5591_v13  ;;  %v2921_v53 = vld [vmem:[%s5947_s6 + $0x18] sm:$0xff] }
 0x656   :  { %v4006_v47 = vpop.eup %4005  ;;  %v2583_v1 = vmul.f32 %v4004_v20, %v5461_v51  ;;  %v629_v51 = vld [vmem:[%s5945_s4 + $0x58] sm:$0xff]  ;;  %4031 = vrcp.f32 %v2421_v33 }
 0x657   :  { %3697 = vmatpush3.xpose.msra.mxu0 %v2584_v21  ;;  %3734 = vmatpush3.xpose.msra.mxu1 %v2599_v56  ;;  %v4008_v29 = vpop.eup %4007  ;;  %v2598_v55 = vmul.f32 %v4006_v47, %v5467_v37  ;;  %4033 = vrcp.f32 %v5595_v26  ;;  %v2473_v21 = vpop.xlane.xlu0 %2472  ;;  %v6114_v56 = vld [vmem:[#allocation14_spill] sm:$0xff]  ;;  %v6115_v33 = vld [vmem:[#allocation32_spill] sm:$0xff] }
 0x658   :  { %3698 = vmatprep.subr.mxu0 %v6109_v23  ;;  %3735 = vmatprep.subr.mxu1 %v6109_v23  ;;  %v4010_v46 = vpop.eup %4009  ;;  %v2597_v38 = vmul.f32 %v4008_v29, %v5438_v49  ;;  %4035 = vrcp.f32 %v5569_v3 }
 0x659   :  { %v4012_v12 = vpop.eup %4011  ;;  %v2582_v57 = vmul.f32 %v4010_v46, %v5475_v27  ;;  %v5761_v9 = vpop.xlane.xlu1 %2504  ;;  %4037 = vrcp.f32 %v2419_v41  ;;  %v6116_v46 = vld [vmem:[#allocation43_spill] sm:$0xff] }
 0x65a   :  { %v4014_v37 = vpop.eup %4013  ;;  %v2581_v49 = vmul.f32 %v4012_v12, %v5443_v19  ;;  %4039 = vrcp.f32 %v5573_v7  ;;  %v6117_v12 = vld [vmem:[#allocation33_spill] sm:$0xff] }
 0x65b   :  { %3699 = vmatpush3.xpose.msra.mxu0 %v2583_v1  ;;  %3736 = vmatpush3.xpose.msra.mxu1 %v2598_v55  ;;  %v4016_v32 = vpop.eup %4015  ;;  %v2596_v27 = vmul.f32 %v4014_v37, %v5448_v31  ;;  %v6111_v31 = vld [vmem:[#allocation38_spill] sm:$0xff]  ;;  %4041 = vrcp.f32 %v5718_v45  ;;  %v5790_v7 = vpop.xlane.xlu0 %2468 }
 0x65c   :  { %3700 = vmatprep.subr.mxu0 %v6109_v23  ;;  %3737 = vmatprep.subr.mxu1 %v6109_v23  ;;  %v4018_v5 = vpop.eup %4017  ;;  %v2595_v13 = vmul.f32 %v4016_v32, %v6111_v31  ;;  %4043 = vrcp.f32 %v6116_v46  ;;  %v6122_v31 = vld [vmem:[#allocation30_spill] sm:$0xff] }
 0x65d   :  { %v4020_v22 = vpop.eup %4019  ;;  %v2580_v19 = vmul.f32 %v4018_v5, %v5452_v52  ;;  %v5772_v61 = vpop.xlane.xlu1 %2500  ;;  %v6112_v52 = vld [vmem:[#allocation12_spill] sm:$0xff]  ;;  %4045 = vrcp.f32 %v5730_v10 }
 0x65e   :  { %v4022_v62 = vpop.eup %4021  ;;  %v2579_v2 = vmul.f32 %v4020_v22, %v6112_v52  ;;  %4047 = vrcp.f32 %v5564_v8  ;;  %v6124_v52 = vld [vmem:[#allocation42_spill] sm:$0xff] }
 0x65f   :  { %3701 = vmatpush3.xpose.msra.mxu0 %v2582_v57  ;;  %3738 = vmatpush3.xpose.msra.mxu1 %v2597_v38  ;;  %v4024_v26 = vpop.eup %4023  ;;  %v2594_v15 = vmul.f32 %v4022_v62, %v6113_v0  ;;  %v6118_v38 = vld [vmem:[#allocation11_spill] sm:$0xff]  ;;  %4049 = vrcp.f32 %v5698_v4  ;;  %v5805_v22 = vpop.xlane.xlu0 %2466 }
 0x660   :  { %687 = vperm.xlu1 %3856, %v629_v51   ;;  %3702 = vmatprep.subr.mxu0 %v6109_v23  ;;  %v4026_v20 = vpop.eup %4025  ;;  %v2593_v29 = vmul.f32 %v4024_v26, %v6115_v33  ;;  %v6127_v33 = vld [vmem:[#allocation28_spill] sm:$0xff] }
 0x661   :  { %3739 = vmatprep.subr.mxu1 %v6109_v23  ;;  %v4028_v3 = vpop.eup %4027  ;;  %v2578_v47 = vmul.f32 %v4026_v20, %v6114_v56  ;;  %v5787_v55 = vpop.xlane.xlu1 %2498 }
 0x662   :  { %v4030_v1 = vpop.eup %4029  ;;  %v2577_v57 = vmul.f32 %v4028_v3, %v6117_v12  ;;  %v6129_v12 = vld [vmem:[#allocation29_spill] sm:$0xff] }
 0x663   :  { %3703 = vmatpush3.xpose.msra.mxu0 %v2581_v49  ;;  %3740 = vmatpush3.xpose.msra.mxu1 %v2596_v27  ;;  %v4032_v45 = vpop.eup %4031  ;;  %v2592_v51 = vmul.f32 %v4030_v1, %v6118_v38  ;;  %v6119_v49 = vld [vmem:[#allocation37_spill] sm:$0xff]  ;;  %v6128_v1 = vld [vmem:[#allocation35_spill] sm:$0xff] }
 0x664   :  { %2924 = vperm.xlu1 %3856, %v2918_v40   ;;  %3704 = vmatprep.subr.mxu0 %v6109_v23  ;;  %v4034_v37 = vpop.eup %4033  ;;  %v6120_v27 = vld [vmem:[#allocation9_spill] sm:$0xff] }
 0x665   :  { %3741 = vmatprep.subr.mxu1 %v6109_v23  ;;  %v5798_v41 = vpop.xlane.xlu1 %2496  ;;  %v4036_v32 = vpop.eup %4035  ;;  %v2576_v10 = vmul.f32 %v4034_v37, %v6119_v49  ;;  %v2591_v40 = vmul.f32 %v4032_v45, %v6120_v27  ;;  %v6130_v38 = vld [vmem:[#allocation17_spill] sm:$0xff] }
 0x666   :  { %v4038_v5 = vpop.eup %4037  ;;  %v2575_v4 = vmul.f32 %v4036_v32, %v6122_v31 }
 0x667   :  { %3705 = vmatpush3.xpose.msra.mxu0 %v2580_v19  ;;  %3742 = vmatpush3.xpose.msra.mxu1 %v2595_v13  ;;  %v6121_v19 = vld [vmem:[#allocation41_spill] sm:$0xff]  ;;  %v4040_v8 = vpop.eup %4039  ;;  %v6123_v13 = vld [vmem:[#allocation36_spill] sm:$0xff] }
 0x668   :  { %2929 = vperm.xlu1 %3856, %v2919_v42   ;;  %3706 = vmatprep.subr.mxu0 %v6109_v23  ;;  %4051 = vrcp.f32 %v6121_v19  ;;  %v2590_v42 = vmul.f32 %v4038_v5, %v6123_v13  ;;  %v4042_v62 = vpop.eup %4041 }
 0x669   :  { %3743 = vmatprep.subr.mxu1 %v6109_v23  ;;  %4053 = vrcp.f32 %v5711_v44  ;;  %v2495_v26 = vpop.xlane.xlu1 %2494  ;;  %v4044_v0 = vpop.eup %4043 }
 0x66a   :  { %4055 = vrcp.f32 %v6124_v52  ;;  %v4046_v3 = vpop.eup %4045 }
 0x66b   :  { %3707 = vmatpush3.xpose.msra.mxu0 %v2579_v2  ;;  %3744 = vmatpush3.xpose.msra.mxu1 %v2594_v15  ;;  %v2465_v2 = vpop.xlane.xlu0 %2464  ;;  %4057 = vrcp.f32 %v5761_v9  ;;  %v6125_v15 = vld [vmem:[#allocation31_spill] sm:$0xff]  ;;  %v2588_v46 = vmul.f32 %v4046_v3, %v6128_v1 }
 0x66c   :  { %2939 = vperm.xlu1 %3856, %v2921_v53   ;;  %3708 = vmatprep.subr.mxu0 %v6109_v23  ;;  %v2574_v44 = vmul.f32 %v4040_v8, %v6125_v15  ;;  %v6126_v53 = vld [vmem:[#allocation7_spill] sm:$0xff]  ;;  %4059 = vrcp.f32 %v2473_v21  ;;  %v6133_v8 = vld [vmem:[#allocation5_spill] sm:$0xff] }
 0x66d   :  { %3745 = vmatprep.subr.mxu1 %v6109_v23  ;;  %v2589_v20 = vmul.f32 %v4042_v62, %v6126_v53 }
 0x66f   :  { %3709 = vmatpush3.xpose.msra.mxu0 %v2578_v47  ;;  %3746 = vmatpush3.xpose.msra.mxu1 %v2593_v29  ;;  %v4048_v47 = vpop.eup %4047  ;;  %v2573_v29 = vmul.f32 %v4044_v0, %v6127_v33  ;;  %v2471_v45 = vpop.xlane.xlu0 %2470 }
 0x670   :  { %3710 = vmatprep.subr.mxu0 %v6109_v23  ;;  %3747 = vmatprep.subr.mxu1 %v6109_v23  ;;  %v4050_v9 = vpop.eup %4049 }
 0x673   :  { %3711 = vmatpush3.xpose.msra.mxu0 %v2577_v57  ;;  %3748 = vmatpush3.xpose.msra.mxu1 %v2592_v51  ;;  %v2572_v57 = vmul.f32 %v4048_v47, %v6129_v12  ;;  %v2587_v51 = vmul.f32 %v4050_v9, %v6130_v38  ;;  %v678_v49 = vpop.permute.xlu0 %677  ;;  %v6139_v47 = vld [vmem:[#allocation19_spill] sm:$0xff]  ;;  %v6142_v38 = vld [vmem:[#allocation13_spill] sm:$0xff] }
 0x674   :  { %3712 = vmatprep.subr.mxu0 %v6109_v23  ;;  %3749 = vmatprep.subr.mxu1 %v6109_v23  ;;  %v839_v31 = vadd.f32 %v6133_v8, %v678_v49 }
 0x675   :  { %v4052_v21 = vpop.eup %4051 }
 0x676   :  { %v4054_v37 = vpop.eup %4053 }
 0x677   :  { %3713 = vmatpush3.xpose.msra.mxu0 %v2576_v10  ;;  %3750 = vmatpush3.xpose.msra.mxu1 %v2591_v40  ;;  %v6131_v10 = vld [vmem:[#allocation26_spill] sm:$0xff] }
 0x678   :  { %3714 = vmatprep.subr.mxu0 %v6109_v23  ;;  %3751 = vmatprep.subr.mxu1 %v6109_v23  ;;  %v2571_v27 = vmul.f32 %v4052_v21, %v6131_v10  ;;  %v6132_v40 = vld [vmem:[#allocation34_spill] sm:$0xff]  ;;  %v6144_v10 = vld [vmem:[#allocation24_spill] sm:$0xff] }
 0x679   :  { %v2586_v5 = vmul.f32 %v4054_v37, %v6132_v40  ;;  %v6143_v37 = vld [vmem:[#allocation22_spill] sm:$0xff]  ;;  %v6145_v40 = vld [vmem:[#allocation20_spill] sm:$0xff] }
 0x67b   :  { %3715 = vmatpush3.xpose.msra.mxu0 %v2575_v4  ;;  %3752 = vmatpush3.xpose.msra.mxu1 %v2590_v42  ;;  %v6134_v4 = vld [vmem:[#allocation27_spill] sm:$0xff]  ;;  %v6135_v42 = vld [vmem:[#allocation16_spill] sm:$0xff] }
 0x67c   :  { %3716 = vmatprep.subr.mxu0 %v6109_v23  ;;  %3753 = vmatprep.subr.mxu1 %v6109_v23 }
 0x67e   :  { %v2503_v56 = vpop.xlane.xlu1 %2502 }
 0x67f   :  { %3717 = vmatpush3.xpose.msra.mxu0 %v2574_v44  ;;  %3754 = vmatpush3.xpose.msra.mxu1 %v2589_v20  ;;  %4061 = vrcp.f32 %v2503_v56  ;;  %v6138_v56 = vld [vmem:[#allocation40_spill] sm:$0xff] }
 0x680   :  { %3718 = vmatprep.subr.mxu0 %v6109_v23  ;;  %3755 = vmatprep.subr.mxu1 %v6109_v23  ;;  %4063 = vrcp.f32 %v5772_v61  ;;  %v4056_v61 = vpop.eup %4055 }
 0x681   :  { %4065 = vrcp.f32 %v2471_v45  ;;  %v4058_v19 = vpop.eup %4057  ;;  %v2570_v13 = vmul.f32 %v4056_v61, %v6134_v4  ;;  %v6141_v45 = vld [vmem:[#allocation21_spill] sm:$0xff] }
 0x682   :  { %v2463_v32 = vpop.xlane.xlu1 %2462  ;;  %4067 = vrcp.f32 %v5787_v55  ;;  %v4060_v55 = vpop.eup %4059  ;;  %v2633_v62 = vmul.f32 %v4058_v19, %v6135_v42 }
 0x683   :  { %3719 = vmatpush3.xpose.msra.mxu0 %v2573_v29  ;;  %3756 = vmatpush3.xpose.msra.mxu1 %v2588_v46  ;;  %4069 = vrcp.f32 %v5790_v7  ;;  %v6140_v46 = vld [vmem:[#allocation18_spill] sm:$0xff] }
 0x684   :  { %3720 = vmatprep.subr.mxu0 %v6109_v23  ;;  %3757 = vmatprep.subr.mxu1 %v6109_v23  ;;  %4071 = vrcp.f32 %v5798_v41  ;;  %v6136_v41 = vld [vmem:[#allocation6_spill] sm:$0xff] }
 0x685   :  { %4073 = vrcp.f32 %v5805_v22  ;;  %v6137_v22 = vld [vmem:[#allocation23_spill] sm:$0xff] }
 0x686   :  { %v673_v7 = vpop.permute.xlu1 %672  ;;  %4075 = vrcp.f32 %v2495_v26  ;;  %v2617_v53 = vmul.f32 %v4060_v55, %v6137_v22 }
 0x687   :  { %3721 = vmatpush3.xpose.msra.mxu0 %v2572_v57  ;;  %3758 = vmatpush3.xpose.msra.mxu1 %v2587_v51  ;;  %v834_v0 = vadd.f32 %v6136_v41, %v673_v7  ;;  %4077 = vrcp.f32 %v2465_v2 }
 0x688   :  { %3722 = vmatprep.subr.mxu0 %v6109_v23  ;;  %3759 = vmatprep.subr.mxu1 %v6109_v23  ;;  %4079 = vrcp.f32 %v2463_v32 }
 0x68b   :  { %3723 = vmatpush3.xpose.msra.mxu0 %v2571_v27  ;;  %3760 = vmatpush3.xpose.msra.mxu1 %v2586_v5 }
 0x68c   :  { %3724 = vmatprep.subr.mxu0 %v6109_v23  ;;  %3799 = vmatprep.subr.mxu1 %v6109_v23  ;;  %v4062_v52 = vpop.eup %4061 }
 0x68d   :  { %v4064_v44 = vpop.eup %4063  ;;  %v2632_v20 = vmul.f32 %v4062_v52, %v5575_v28 }
 0x68e   :  { %3762 = vmatmul.mubr.f32.vlgmr.msra.gmra.mxu1 %v839_v31  ;;  %v4066_v3 = vpop.eup %4065  ;;  %v2631_v33 = vmul.f32 %v4064_v44, %v6139_v47 }
 0x68f   :  { %3725 = vmatpush3.xpose.msra.mxu0 %v2570_v13  ;;  %3800 = vmatpush3.xpose.msra.mxu1 %v2633_v62  ;;  %v2493_v15 = vpop.xlane.xlu0 %2492  ;;  %v4068_v26 = vpop.eup %4067  ;;  %v2616_v2 = vmul.f32 %v4066_v3, %v6138_v56 }
 0x690   :  { %3764 = vmatprep.subr.mxu0 %v6109_v23  ;;  %3801 = vmatprep.subr.mxu1 %v6109_v23  ;;  %4081 = vrcp.f32 %v2493_v15  ;;  %v4070_v28 = vpop.eup %4069  ;;  %v2630_v21 = vmul.f32 %v4068_v26, %v6141_v45 }
 0x691   :  { %3831 = vmatprep.mubr.msk.f32.mxu1 %vm4150_vm4, %v6109_v23  ;;  %v4072_v1 = vpop.eup %4071  ;;  %v2615_v9 = vmul.f32 %v4070_v28, %v6140_v46 }
 0x692   :  { %3727 = vmatmul.mubr.f32.vlgmr.msra.gmra.mxu0 %v834_v0  ;;  %v4074_v12 = vpop.eup %4073  ;;  %v2629_v32 = vmul.f32 %v4072_v1, %v6143_v37 }
 0x693   :  { %3765 = vmatpush3.xpose.msra.mxu0 %v2617_v53  ;;  %3802 = vmatpush3.xpose.msra.mxu1 %v2632_v20  ;;  %v2491_v29 = vpop.xlane.xlu0 %2490  ;;  %v4076_v57 = vpop.eup %4075  ;;  %v2614_v51 = vmul.f32 %v4074_v12, %v6142_v38 }
 0x694   :  { %3766 = vmatprep.subr.mxu0 %v6109_v23  ;;  %3803 = vmatprep.subr.mxu1 %v6109_v23  ;;  %4083 = vrcp.f32 %v2491_v29  ;;  %v4078_v61 = vpop.eup %4077  ;;  %v2628_v5 = vmul.f32 %v4076_v57, %v6145_v40 }
 0x695   :  { %3796 = vmatprep.mubr.msk.f32.mxu0 %vm4150_vm4, %v6109_v23  ;;  %v4080_v49 = vpop.eup %4079  ;;  %v2613_v27 = vmul.f32 %v4078_v61, %v6144_v10 }
 0x696   :  { %v2612_v8 = vmul.f32 %v4080_v49, %v5582_v39 }
 0x697   :  { %3767 = vmatpush3.xpose.msra.mxu0 %v2616_v2  ;;  %3804 = vmatpush3.xpose.msra.mxu1 %v2631_v33  ;;  %v2459_v7 = vpop.xlane.xlu0 %2458 }
 0x698   :  { %3768 = vmatprep.subr.mxu0 %v6109_v23  ;;  %3805 = vmatprep.subr.mxu1 %v6109_v23 }
 0x69b   :  { %3769 = vmatpush3.xpose.msra.mxu0 %v2615_v9  ;;  %3806 = vmatpush3.xpose.msra.mxu1 %v2630_v21  ;;  %v2457_v13 = vpop.xlane.xlu0 %2456 }
 0x69c   :  { %3770 = vmatprep.subr.mxu0 %v6109_v23  ;;  %3807 = vmatprep.subr.mxu1 %v6109_v23 }
 0x69d   :  { %v4082_v19 = vpop.eup %4081 }
 0x69e   :  { %v2627_v31 = vmul.f32 %v4082_v19, %v5599_v54 }
 0x69f   :  { %3771 = vmatpush3.xpose.msra.mxu0 %v2614_v51  ;;  %3808 = vmatpush3.xpose.msra.mxu1 %v2629_v32  ;;  %v2455_v42 = vpop.xlane.xlu0 %2454 }
 0x6a0   :  { %3772 = vmatprep.subr.mxu0 %v6109_v23  ;;  %3809 = vmatprep.subr.mxu1 %v6109_v23 }
 0x6a1   :  { %v4084_v55 = vpop.eup %4083 }
 0x6a2   :  { %v2626_v4 = vmul.f32 %v4084_v55, %v5609_v59  ;;  %v6147_v55 = vld [vmem:[#allocation10_spill] sm:$0xff] }
 0x6a3   :  { %3773 = vmatpush3.xpose.msra.mxu0 %v2613_v27  ;;  %3810 = vmatpush3.xpose.msra.mxu1 %v2628_v5  ;;  %v2453_v39 = vpop.xlane.xlu0 %2452 }
 0x6a4   :  { %3774 = vmatprep.subr.mxu0 %v6109_v23  ;;  %3811 = vmatprep.subr.mxu1 %v6109_v23 }
 0x6a7   :  { %3775 = vmatpush3.xpose.msra.mxu0 %v2612_v8  ;;  %3812 = vmatpush3.xpose.msra.mxu1 %v2627_v31  ;;  %v2451_v41 = vpop.xlane.xlu0 %2450  ;;  %v6146_v8 = vld [vmem:[#allocation8_spill] sm:$0xff] }
 0x6a8   :  { %3813 = vmatprep.subr.mxu1 %v6109_v23  ;;  %3776 = vmatprep.subr.mxu0 %v6109_v23 }
 0x6ab   :  { %3814 = vmatpush3.xpose.msra.mxu1 %v2626_v4  ;;  %v2449_v59 = vpop.xlane.xlu0 %2448 }
 0x6ac   :  { %3815 = vmatprep.subr.mxu1 %v6109_v23 }
 0x6af   :  { %v2447_v47 = vpop.xlane.xlu0 %2446 }
 0x6b3   :  { %v2445_v1 = vpop.xlane.xlu0 %2444 }
 0x6b7   :  { %v2461_v62 = vpop.xlane.xlu1 %2460  ;;  %v2443_v38 = vpop.xlane.xlu0 %2442 }
 0x6b8   :  { %4085 = vrcp.f32 %v2461_v62 }
 0x6b9   :  { %4087 = vrcp.f32 %v2459_v7 }
 0x6bb   :  { %v2489_v54 = vpop.xlane.xlu1 %2488 }
 0x6bc   :  { %4089 = vrcp.f32 %v2489_v54  ;;  %v2915_v54 = vld [vmem:[%s5946_s5 + $0x8] sm:$0xff] }
 0x6bd   :  { %4091 = vrcp.f32 %v2457_v13 }
 0x6bf   :  { %v2487_v52 = vpop.xlane.xlu1 %2486 }
 0x6c0   :  { %4093 = vrcp.f32 %v2487_v52  ;;  %v2916_v52 = vld [vmem:[%s5946_s5 + $0x10] sm:$0xff] }
 0x6c1   :  { %4095 = vrcp.f32 %v2455_v42 }
 0x6c3   :  { %v2485_v0 = vpop.xlane.xlu1 %2484 }
 0x6c4   :  { %4097 = vrcp.f32 %v2485_v0 }
 0x6c5   :  { %v4086_v15 = vpop.eup %4085  ;;  %4099 = vrcp.f32 %v2453_v39 }
 0x6c6   :  { %v2611_v22 = vmul.f32 %v4086_v15, %v5672_v60  ;;  %v4088_v53 = vpop.eup %4087 }
 0x6c7   :  { %v2483_v44 = vpop.xlane.xlu1 %2482  ;;  %v2610_v56 = vmul.f32 %v4088_v53, %v5620_v25  ;;  %v4121_v53 = vld [vmem:[%s5941_s0 + $0x8] sm:$0xff] }
 0x6c8   :  { %4101 = vrcp.f32 %v2483_v44  ;;  %3777 = vmatpush3.xpose.msra.mxu0 %v2611_v22 }
 0x6c9   :  { %v4090_v20 = vpop.eup %4089  ;;  %3778 = vmatprep.subr.mxu0 %v6109_v23  ;;  %4103 = vrcp.f32 %v2451_v41  ;;  %v2917_v41 = vld [vmem:[%s5946_s5 + $0x18] sm:$0xff] }
 0x6ca   :  { %v2625_v3 = vmul.f32 %v4090_v20, %v5682_v34  ;;  %v4092_v2 = vpop.eup %4091 }
 0x6cb   :  { %v2481_v26 = vpop.xlane.xlu1 %2480  ;;  %v2609_v34 = vmul.f32 %v4092_v2, %v5627_v36  ;;  %v4122_v2 = vld [vmem:[%s5941_s0] sm:$0xff] }
 0x6cc   :  { %4105 = vrcp.f32 %v2481_v26  ;;  %3816 = vmatpush3.xpose.msra.mxu1 %v2625_v3  ;;  %3779 = vmatpush3.xpose.msra.mxu0 %v2610_v56 }
 0x6cd   :  { %v4094_v33 = vpop.eup %4093  ;;  %3817 = vmatprep.subr.mxu1 %v6109_v23  ;;  %3780 = vmatprep.subr.mxu0 %v6109_v23  ;;  %4107 = vrcp.f32 %v2449_v59 }
 0x6ce   :  { %v2624_v60 = vmul.f32 %v4094_v33, %v5687_v6  ;;  %v4096_v29 = vpop.eup %4095 }
 0x6cf   :  { %v2479_v28 = vpop.xlane.xlu1 %2478  ;;  %v2608_v6 = vmul.f32 %v4096_v29, %v5632_v50 }
 0x6d0   :  { %4109 = vrcp.f32 %v2479_v28  ;;  %3818 = vmatpush3.xpose.msra.mxu1 %v2624_v60  ;;  %3781 = vmatpush3.xpose.msra.mxu0 %v2609_v34  ;;  %v4123_v34 = vld [vmem:[%s5941_s0 + $0x18] sm:$0xff] }
 0x6d1   :  { %v4098_v25 = vpop.eup %4097  ;;  %3819 = vmatprep.subr.mxu1 %v6109_v23  ;;  %3782 = vmatprep.subr.mxu0 %v6109_v23  ;;  %4111 = vrcp.f32 %v2447_v47 }
 0x6d2   :  { %v2623_v46 = vmul.f32 %v4098_v25, %v5692_v11  ;;  %v4100_v45 = vpop.eup %4099 }
 0x6d3   :  { %v2477_v9 = vpop.xlane.xlu1 %2476  ;;  %v2607_v57 = vmul.f32 %v4100_v45, %v5641_v18 }
 0x6d4   :  { %4113 = vrcp.f32 %v2477_v9  ;;  %3820 = vmatpush3.xpose.msra.mxu1 %v2623_v46  ;;  %3783 = vmatpush3.xpose.msra.mxu0 %v2608_v6 }
 0x6d5   :  { %v4102_v36 = vpop.eup %4101  ;;  %3821 = vmatprep.subr.mxu1 %v6109_v23  ;;  %3784 = vmatprep.subr.mxu0 %v6109_v23  ;;  %4115 = vrcp.f32 %v2445_v1  ;;  %v4124_v1 = vld [vmem:[%s5941_s0 + $0x10] sm:$0xff] }
 0x6d6   :  { %v2622_v21 = vmul.f32 %v4102_v36, %v5695_v30  ;;  %v4104_v11 = vpop.eup %4103 }
 0x6d7   :  { %v2475_v12 = vpop.xlane.xlu1 %2474  ;;  %v2606_v37 = vmul.f32 %v4104_v11, %v5648_v17 }
 0x6d8   :  { %4117 = vrcp.f32 %v2475_v12  ;;  %3822 = vmatpush3.xpose.msra.mxu1 %v2622_v21  ;;  %3785 = vmatpush3.xpose.msra.mxu0 %v2607_v57 }
 0x6d9   :  { %v4106_v50 = vpop.eup %4105  ;;  %3823 = vmatprep.subr.mxu1 %v6109_v23  ;;  %3786 = vmatprep.subr.mxu0 %v6109_v23  ;;  %4119 = vrcp.f32 %v2443_v38 }
 0x6da   :  { %v2621_v51 = vmul.f32 %v4106_v50, %v5700_v24  ;;  %v4108_v30 = vpop.eup %4107 }
 0x6db   :  { %v2605_v61 = vmul.f32 %v4108_v30, %v5655_v43 }
 0x6dc   :  { %3824 = vmatpush3.xpose.msra.mxu1 %v2621_v51  ;;  %3787 = vmatpush3.xpose.msra.mxu0 %v2606_v37 }
 0x6dd   :  { %v4110_v32 = vpop.eup %4109  ;;  %3825 = vmatprep.subr.mxu1 %v6109_v23  ;;  %3788 = vmatprep.subr.mxu0 %v6109_v23 }
 0x6de   :  { %v2620_v18 = vmul.f32 %v4110_v32, %v5706_v48  ;;  %v4112_v49 = vpop.eup %4111  ;;  %v688_v48 = vpop.permute.xlu1 %687 }
 0x6df   :  { %v2604_v24 = vmul.f32 %v4112_v49, %v5662_v14  ;;  %v849_v31 = vadd.f32 %v6146_v8, %v688_v48  ;;  %v683_v14 = vpop.permute.xlu0 %682 }
 0x6e0   :  { %3826 = vmatpush3.xpose.msra.mxu1 %v2620_v18  ;;  %3789 = vmatpush3.xpose.msra.mxu0 %v2605_v61  ;;  %v844_v7 = vadd.f32 %v6147_v55, %v683_v14 }
 0x6e1   :  { %v4114_v10 = vpop.eup %4113  ;;  %3827 = vmatprep.subr.mxu1 %v6109_v23  ;;  %3790 = vmatprep.subr.mxu0 %v6109_v23 }
 0x6e2   :  { %v2619_v17 = vmul.f32 %v4114_v10, %v5714_v63  ;;  %v4116_v27 = vpop.eup %4115  ;;  %v2925_v0 = vpop.permute.xlu1 %2924 }
 0x6e3   :  { %v2603_v5 = vmul.f32 %v4116_v27, %v5669_v16  ;;  %v2935_v60 = vpop.permute.xlu0 %2934 }
 0x6e4   :  { %3828 = vmatpush3.xpose.msra.mxu1 %v2619_v17  ;;  %3791 = vmatpush3.xpose.msra.mxu0 %v2604_v24 }
 0x6e5   :  { %v4118_v40 = vpop.eup %4117  ;;  %3829 = vmatprep.subr.mxu1 %v6109_v23  ;;  %3792 = vmatprep.subr.mxu0 %v6109_v23 }
 0x6e6   :  { %v2618_v43 = vmul.f32 %v4118_v40, %v5722_v35  ;;  %v4120_v19 = vpop.eup %4119  ;;  %v2914_v35 = vld [vmem:[%s5946_s5] sm:$0xff]  ;;  %v2930_v15 = vpop.permute.xlu1 %2929  ;;  %s4151_s5 = smov [#allocation2]  }
 0x6e7   :  { %v2602_v63 = vmul.f32 %v4120_v19, %v5676_v58  ;;  %s3052_s3 = sshll.u32 %s4151_s5, 4  ;;  %s3053_s3 = int_to_ptr.vmem [resolvable:$true] %s3052_s3 }
 0x6e8   :  { %3830 = vmatpush3.xpose.msra.mxu1 %v2618_v43  ;;  %3793 = vmatpush3.xpose.msra.mxu0 %v2603_v5  ;;  %s4125_s19 = scalar_lea.vmem %s3053_s3, 512  ;;  %p4130_p1 = scmp.lt.s32.totalorder %s3053_s3, %s3053_s3 }
 0x6e9   :  { %3794 = vmatprep.subr.mxu0 %v6109_v23  ;;  %p4126_p0 = scmp.ne.s32.totalorder %s3053_s3, %s4125_s19  ;;  %p4131_p2 = scmp.lt.s32.totalorder %s4125_s19, %s4125_s19 }
 0x6ea   :  { %v2940_v26 = vpop.permute.xlu1 %2939 }
 0x6eb   :  { %3832 = vmatmul.mubr.f32.vlgmr.msra.gmra.mxu1 %v849_v31  ;;  %p4132_p3 = por %p4131_p2, %p4130_p1 }
 0x6ec   :  { %3795 = vmatpush3.xpose.msra.mxu0 %v2602_v63 }
 0x6ed   :  { %p4133_p4 = pnand %p4132_p3, %p4126_p0 }
 0x6ef   :  { %3797 = vmatmul.mubr.f32.vlgmr.msra.gmra.mxu0 %v844_v7 }
 0x6f0   :  { %3842 = vmatprep.mubr.msk.f32.mxu0 %vm6148_vm1, %v2914_v35 }
 0x74e   :  { %v2770_v16 = vpop.f32.mrf.mxu1 }
 0x750   :  { %v3763_v4 = vpop.f32.mrf.mxu1 }
 0x752   :  { %v2700_v13 = vpop.f32.mrf.mxu0 }
 0x754   :  { %v3728_v42 = vpop.f32.mrf.mxu0 }
 0x7ab   :  { %v2910_v62 = vpop.f32.mrf.mxu1 }
 0x7ac   :  { %3834 = vmatprep.subr.mxu0 %v2910_v62 }
 0x7ad   :  { %v3833_v23 = vpop.f32.mrf.mxu1  ;;  %3835 = vmatpush3.msra.mxu0 %v2910_v62 }
 0x7af   :  { %v2840_v39 = vpop.f32.mrf.mxu0 }
 0x7b0   :  { %3836 = vmatprep.subr.mxu0 %v2840_v39 }
 0x7b1   :  { %v3798_v58 = vpop.f32.mrf.mxu0  ;;  %3837 = vmatpush3.msra.mxu0 %v2840_v39 }
 0x7b2   :  { %3838 = vmatprep.subr.mxu0 %v2770_v16 }
 0x7b3   :  { %3839 = vmatpush3.msra.mxu0 %v2770_v16 }
 0x7b4   :  { %3840 = vmatprep.subr.mxu0 %v2700_v13 }
 0x7b5   :  { %3841 = vmatpush3.msra.mxu0 %v2700_v13 }
 0x7b6   :  { %3843 = vmatmul.mubr.msk.f32.vlgmr.msra.gmra.mxu0 %vm6149_vm5, %v2915_v54 }
 0x7b7   :  { %3845 = vmatprep.mubr.msk.f32.mxu0 %vm6150_vm14, %v2916_v52 }
 0x7ba   :  { %3846 = vmatmul.mubr.msk.f32.gmra.mxu0 %vm6151_vm2, %v2917_v41 }
 0x876   :  { %v3844_v59 = vpop.f32.mrf.mxu0 }
 0x877   :  { %v3026_v44 = vadd.f32 %v3844_v59, %v2930_v15 }
 0x878   :  { %v3020_v22 = vpop.f32.mrf.mxu0 }
 0x879   :  { %v3040_v20 = vadd.f32 %v4121_v53, %v3026_v44  ;;  %v3021_v3 = vadd.f32 %v3020_v22, %v2925_v0 }
 0x87a   :  { %v3847_v56 = vpop.f32.mrf.mxu0 }
 0x87b   :  { %3044 = vst [vmem:[#allocation2 + $0x8] sm:$0xff] %v3040_v20  ;;  %v3039_v47 = vadd.f32 %v4122_v2, %v3021_v3  ;;  %v3036_v33 = vadd.f32 %v3847_v56, %v2940_v26 }
 0x87c   :  { %v3030_v28 = vpop.f32.mrf.mxu0 }
 0x87d   :  { %3043 = vst [vmem:[#allocation2] sm:$0xff] %v3039_v47  ;;  %v3042_v29 = vadd.f32 %v4123_v34, %v3036_v33  ;;  %v3031_v25 = vadd.f32 %v3030_v28, %v2935_v60 }
 0x87f   :  { %3046 = vst [vmem:[#allocation2 + $0x18] sm:$0xff] %v3042_v29  ;;  %v3041_v46 = vadd.f32 %v4124_v1, %v3031_v25 }
 0x881   :  { %3045 = vst [vmem:[#allocation2 + $0x10] sm:$0xff] %v3041_v46 }
 0x882   :  { %4136 = shalt.err (!%p4133_p4)
}
 0x883   :  { %s4152_s20 = smov 128   ;;  %s4153_s21 = smov 8  }
 0x884   :  { %3058 = dma.vmem_to_hbm [thread:$0]  %s3053_s3, 512, %s5948_s7, [#allocation3], %s4152_s20, %s4152_s20, %s4153_s21  }
 0x885   :  { %4145 = dma.done.wait [#allocation3], 512  }
 0x886   :  { %4146 = vsyncadd [#allocation3], 4294966784 }
 0x887   :  { %3062 = vsyncpa [#allocation3], 1 }

</bundles_post_ra>
